<compile_context>
chip_gen: v7x
topology: tpu7x:2x2x1
jax: 0.10.0
libtpu: 0.0.40
codegen_flags: <defaults>
</compile_context>

<pallas_src>
import math
from functools import partial

import jax
import jax.numpy as jnp
from jax.experimental import pallas as pl
from jax.experimental.pallas import tpu as pltpu


def _layer_norm(x, gamma, beta, eps=1e-5):
    mu = jnp.mean(x, axis=-1, keepdims=True)
    var = jnp.mean(jnp.square(x - mu), axis=-1, keepdims=True)
    return (x - mu) * jax.lax.rsqrt(var + eps) * gamma + beta


# ----------------------- fused encoder-stack kernel --------------------------
def _make_stack_kernel(Bt, S, D, H, DFF, PC, L):
    Dh = D // H

    def kernel(x_ref, praw_ref, wproj_ref, wqkv_ref, wout_ref,
               w1_ref, w2_ref, vec_ref, o_ref):
        # ---- conditioning projection: once per block, hoisted out of layers
        praw = praw_ref[...].reshape(Bt * S, PC)
        b_proj = vec_ref[0:1, :D]
        p = jnp.dot(praw, wproj_ref[...],
                    preferred_element_type=jnp.float32) + b_proj       # (Bt*S, D)

        x = x_ref[...].reshape(Bt * S, D).astype(jnp.float32)

        # Unrolled layer loop: all weights resident in VMEM, state in vregs.
        for l in range(L):
            r = 1 + 8 * l   # packed-vector rows for this layer
            b_qkv = vec_ref[r + 0:r + 1, :3 * D]
            b_out = vec_ref[r + 1:r + 2, :D]
            b_1 = vec_ref[r + 2:r + 3, :DFF]
            b_2 = vec_ref[r + 3:r + 4, :D]
            g1 = vec_ref[r + 4:r + 5, :D]
            be1 = vec_ref[r + 5:r + 6, :D]
            g2 = vec_ref[r + 6:r + 7, :D]
            be2 = vec_ref[r + 7:r + 8, :D]

            # ---- in-attention conditioning: x += parameters (every layer)
            x = x + p

            # ---- QKV: one wide matmul (Q columns pre-scaled by 1/sqrt(Dh))
            qkv = jnp.dot(x, wqkv_ref[l],
                          preferred_element_type=jnp.float32) + b_qkv  # (Bt*S, 3D)

            # ---- attention (per batch element; heads batched in 3-D einsums)
            ctx_rows = []
            for b in range(Bt):
                qkv_b = qkv[b * S:(b + 1) * S]                          # (S, 3D)
                q = jnp.stack([qkv_b[:, h * Dh:(h + 1) * Dh]
                               for h in range(H)])                      # (H, S, Dh)
                k = jnp.stack([qkv_b[:, D + h * Dh:D + (h + 1) * Dh]
                               for h in range(H)])
                v = jnp.stack([qkv_b[:, 2 * D + h * Dh:2 * D + (h + 1) * Dh]
                               for h in range(H)])
                s = jnp.einsum('hsd,htd->hst', q, k,
                               preferred_element_type=jnp.float32)      # (H, S, S)
                s = s - jnp.max(s, axis=-1, keepdims=True)
                e = jnp.exp(s)
                a = e / jnp.sum(e, axis=-1, keepdims=True)               # exact divide
                ctx = jnp.einsum('hst,htd->hsd', a, v,
                                 preferred_element_type=jnp.float32)    # (H, S, Dh)
                ctx_rows.append(
                    jnp.concatenate([ctx[h] for h in range(H)], axis=-1))  # (S, D)
            ctx_flat = (ctx_rows[0] if Bt == 1
                        else jnp.concatenate(ctx_rows, axis=0))          # (Bt*S, D)

            # ---- output projection: single matmul; head reduction in the MXU
            attn = jnp.dot(ctx_flat, wout_ref[l],
                           preferred_element_type=jnp.float32) + b_out

            # ---- add & norm 1 (post-norm, PyTorch default norm_first=False)
            y = _layer_norm(x + attn, g1, be1)

            # ---- feed-forward (ReLU)
            h1 = jnp.maximum(jnp.dot(y, w1_ref[l],
                                     preferred_element_type=jnp.float32) + b_1, 0.0)
            ff = jnp.dot(h1, w2_ref[l],
                         preferred_element_type=jnp.float32) + b_2

            # ---- add & norm 2
            x = _layer_norm(y + ff, g2, be2)

        o_ref[...] = x.reshape(Bt, S, D).astype(o_ref.dtype)

    return kernel


def fused_encoder_stack(x, praw, FW, *, n_head, block_batch=None):
    """x: (B,S,D) input, praw: (B,S,PC) raw conditioning features."""
    B, S, D = x.shape
    PC = praw.shape[-1]
    L = FW["wqkv"].shape[0]
    DFF = FW["w1"].shape[2]
    VROWS, VMAX = FW["vec"].shape
    H = n_head

    if block_batch is None:
        # keep >=2 grid blocks when possible so the parallel batch axis can be
        # sharded across v7x's two TensorCores (no-op on v5e/v6e).
        block_batch = max(1, B // 2)
    while B % block_batch:
        block_batch -= 1
    Bt = block_batch
    nb = B // Bt

    kernel = _make_stack_kernel(Bt, S, D, H, DFF, PC, L)

    in_specs = [
        pl.BlockSpec((Bt, S, D), lambda i: (i, 0, 0)),          # x block
        pl.BlockSpec((Bt, S, PC), lambda i: (i, 0, 0)),         # raw cond features
        pl.BlockSpec((PC, D), lambda i: (0, 0)),                # w_proj (resident)
        pl.BlockSpec((L, D, 3 * D), lambda i: (0, 0, 0)),       # wqkv, all layers
        pl.BlockSpec((L, D, D), lambda i: (0, 0, 0)),           # wout, all layers
        pl.BlockSpec((L, D, DFF), lambda i: (0, 0, 0)),         # w1, all layers
        pl.BlockSpec((L, DFF, D), lambda i: (0, 0, 0)),         # w2, all layers
        pl.BlockSpec((VROWS, VMAX), lambda i: (0, 0)),          # packed bias/LN vecs
    ]
    out_specs = pl.BlockSpec((Bt, S, D), lambda i: (i, 0, 0))

    return pl.pallas_call(
        kernel,
        out_shape=jax.ShapeDtypeStruct((B, S, D), x.dtype),
        grid_spec=pltpu.PrefetchScalarGridSpec(
            num_scalar_prefetch=0,
            grid=(nb,),
            in_specs=in_specs,
            out_specs=out_specs,
        ),
        compiler_params=pltpu.CompilerParams(
            dimension_semantics=("parallel",),
        ),
    )(x, praw, FW["w_proj_t"], FW["wqkv"], FW["wout"], FW["w1"], FW["w2"],
      FW["vec"])


# --------------------------------- weights -----------------------------------
def init_weights(key, d_model, n_head, dff, num_layers,
                 n_style, style_dim, n_inst, inst_dim):
    keys = jax.random.split(key, 5 + num_layers)

    def rnd(k, shape, scale=0.1):
        return jax.random.normal(k, shape, dtype=jnp.float32) * scale

    W = {
        "n_head": n_head,
        "emb_table": rnd(keys[0], (n_style, style_dim)),
        "w_inst_t": rnd(keys[1], (n_inst, inst_dim)),
        "b_inst": rnd(keys[2], (inst_dim,)),
        "w_proj_t": rnd(keys[3], (2 + style_dim + inst_dim, d_model)),
        "b_proj": rnd(keys[4], (d_model,)),
        "layers": [],
    }
    for li in range(num_layers):
        lk = jax.random.split(keys[5 + li], 8)
        W["layers"].append(dict(
            win_t=rnd(lk[0], (d_model, 3 * d_model)),
            bin=rnd(lk[1], (3 * d_model,)),
            wout_t=rnd(lk[2], (d_model, d_model)),
            bout=rnd(lk[3], (d_model,)),
            w1_t=rnd(lk[4], (d_model, dff)),
            b1=rnd(lk[5], (dff,)),
            w2_t=rnd(lk[6], (dff, d_model)),
            b2=rnd(lk[7], (d_model,)),
            g1=jnp.ones((d_model,), jnp.float32),
            be1=jnp.zeros((d_model,), jnp.float32),
            g2=jnp.ones((d_model,), jnp.float32),
            be2=jnp.zeros((d_model,), jnp.float32),
        ))
    return W


def prepare_fused_weights(W):
    """One-time host-side transform: stack layers, fold 1/sqrt(Dh) into the Q
    columns, pack all small vectors (incl. b_proj and b_qkv) into one array."""
    H = W["n_head"]
    layers = W["layers"]
    D = layers[0]["wout_t"].shape[0]
    DFF = layers[0]["w1_t"].shape[1]
    Dh = D // H
    scale = 1.0 / math.sqrt(Dh)
    VMAX = max(3 * D, DFF)

    def pad(v):
        return jnp.pad(v, (0, VMAX - v.shape[0]))

    wqkv, wout, w1, w2 = [], [], [], []
    vec_rows = [pad(W["b_proj"])]
    for lw in layers:
        win = lw["win_t"].at[:, :D].multiply(scale)      # fold scale into Q cols
        bin_ = lw["bin"].at[:D].multiply(scale)
        wqkv.append(win)                                  # (D, 3D), original layout
        wout.append(lw["wout_t"])                         # (D, D)
        w1.append(lw["w1_t"])
        w2.append(lw["w2_t"])
        vec_rows += [pad(bin_), pad(lw["bout"]), pad(lw["b1"]), pad(lw["b2"]),
                     pad(lw["g1"]), pad(lw["be1"]), pad(lw["g2"]), pad(lw["be2"])]

    return dict(
        wqkv=jnp.stack(wqkv),            # (L, D, 3D)
        wout=jnp.stack(wout),            # (L, D, D)
        w1=jnp.stack(w1),                # (L, D, DFF)
        w2=jnp.stack(w2),                # (L, DFF, D)
        vec=jnp.stack(vec_rows),         # (1 + 8L, max(3D, DFF))
        w_proj_t=W["w_proj_t"],          # (PC, D)
    )


# --------------------------------- forward ------------------------------------
def in_attention_encoder(W, FW, x, density, intensity, style, inst,
                         mask=None, *, n_head):
    # Tiny parameter-path ops (embedding gather, n_inst->inst_dim linear,
    # concat) stay in XLA: far below one MXU tile.
    style_emb = jnp.take(W["emb_table"], style, axis=0)            # (B,S,style_dim)
    inst_emb = jnp.dot(inst, W["w_inst_t"]) + W["b_inst"]          # (B,S,inst_dim)
    praw = jnp.concatenate([density, intensity, style_emb, inst_emb], axis=-1)
    # para_proj + the whole encoder stack is one fused kernel.
    return fused_encoder_stack(x, praw, FW, n_head=n_head)


if __name__ == "__main__":
    B, S = 2, 8
    d_model, n_head, dff = 32, 4, 64
    num_layers = 2
    n_style, style_dim = 4, 8
    n_inst, inst_dim = 6, 8

    key = jax.random.PRNGKey(0)
    kw, kx, kd, ki, ks, kn = jax.random.split(key, 6)
    W = init_weights(kw, d_model, n_head, dff, num_layers,
                     n_style, style_dim, n_inst, inst_dim)
    FW = prepare_fused_weights(W)

    x = jax.random.normal(kx, (B, S, d_model), dtype=jnp.float32)
    density = jax.random.normal(kd, (B, S, 1), dtype=jnp.float32)
    intensity = jax.random.normal(ki, (B, S, 1), dtype=jnp.float32)
    style = jax.random.randint(ks, (B, S), 0, n_style, dtype=jnp.int32)
    inst = jax.random.normal(kn, (B, S, n_inst), dtype=jnp.float32)

    run = jax.jit(partial(in_attention_encoder, n_head=n_head))
    out = run(W, FW, x, density, intensity, style, inst)
    out = jax.block_until_ready(out)
    assert out.shape == (B, S, d_model)
    assert bool(jnp.all(jnp.isfinite(out)))
    print("KERNEL_OK")
</pallas_src>

<mosaic_0001>
module attributes {stable_mosaic.version = 11 : i64} {
  func.func @kernel(%arg0: i32, %arg1: memref<1x8x32xf32, #tpu.memory_space<vmem>>, %arg2: memref<1x8x18xf32, #tpu.memory_space<vmem>>, %arg3: memref<18x32xf32, #tpu.memory_space<vmem>>, %arg4: memref<2x32x96xf32, #tpu.memory_space<vmem>>, %arg5: memref<2x32x32xf32, #tpu.memory_space<vmem>>, %arg6: memref<2x32x64xf32, #tpu.memory_space<vmem>>, %arg7: memref<2x64x32xf32, #tpu.memory_space<vmem>>, %arg8: memref<17x96xf32, #tpu.memory_space<vmem>>, %arg9: memref<1x8x32xf32, #tpu.memory_space<vmem>>) attributes {dimension_semantics = [#tpu.dimension_semantics<parallel>], iteration_bounds = array<i64: 2>, scalar_prefetch = 0 : i64, scratch_operands = 0 : i64, tpu.core_type = #tpu.core_type<tc>, window_params = [{transform_indices = @transform_0, window_bounds = array<i64: 1, 8, 32>}, {transform_indices = @transform_1, window_bounds = array<i64: 1, 8, 18>}, {pipeline_mode = #tpu.pipeline_mode<synchronous>, transform_indices = @transform_2, window_bounds = array<i64: 18, 32>}, {pipeline_mode = #tpu.pipeline_mode<synchronous>, transform_indices = @transform_3, window_bounds = array<i64: 2, 32, 96>}, {pipeline_mode = #tpu.pipeline_mode<synchronous>, transform_indices = @transform_4, window_bounds = array<i64: 2, 32, 32>}, {pipeline_mode = #tpu.pipeline_mode<synchronous>, transform_indices = @transform_5, window_bounds = array<i64: 2, 32, 64>}, {pipeline_mode = #tpu.pipeline_mode<synchronous>, transform_indices = @transform_6, window_bounds = array<i64: 2, 64, 32>}, {pipeline_mode = #tpu.pipeline_mode<synchronous>, transform_indices = @transform_7, window_bounds = array<i64: 17, 96>}, {transform_indices = @transform_8, window_bounds = array<i64: 1, 8, 32>}]} {
    %c0 = arith.constant 0 : index
    %c0_0 = arith.constant 0 : index
    %c0_1 = arith.constant 0 : index
    %0 = vector.load %arg2[%c0, %c0_0, %c0_1] : memref<1x8x18xf32, #tpu.memory_space<vmem>>, vector<1x8x18xf32>
    %1 = vector.shape_cast %0 : vector<1x8x18xf32> to vector<8x18xf32>
    %c0_2 = arith.constant 0 : index
    %c0_3 = arith.constant 0 : index
    %2 = vector.load %arg8[%c0_2, %c0_3] : memref<17x96xf32, #tpu.memory_space<vmem>>, vector<1x32xf32>
    %c0_4 = arith.constant 0 : index
    %c0_5 = arith.constant 0 : index
    %3 = vector.load %arg3[%c0_4, %c0_5] : memref<18x32xf32, #tpu.memory_space<vmem>>, vector<18x32xf32>
    %cst = arith.constant dense<0.000000e+00> : vector<8x32xf32>
    %4 = tpu.matmul %1, %3, %cst {dimension_numbers = #tpu.dot_dimension_numbers<[1], [0], [0], [1], [0, 0, 1, 1], [], []>} : vector<8x18xf32>, vector<18x32xf32>, vector<8x32xf32> -> vector<8x32xf32>
    %5 = vector.broadcast %2 : vector<1x32xf32> to vector<8x32xf32>
    %6 = arith.addf %4, %5 : vector<8x32xf32>
    %c0_6 = arith.constant 0 : index
    %c0_7 = arith.constant 0 : index
    %c0_8 = arith.constant 0 : index
    %7 = vector.load %arg1[%c0_6, %c0_7, %c0_8] : memref<1x8x32xf32, #tpu.memory_space<vmem>>, vector<1x8x32xf32>
    %8 = vector.shape_cast %7 : vector<1x8x32xf32> to vector<8x32xf32>
    %c1 = arith.constant 1 : index
    %c0_9 = arith.constant 0 : index
    %9 = vector.load %arg8[%c1, %c0_9] : memref<17x96xf32, #tpu.memory_space<vmem>>, vector<1x96xf32>
    %c2 = arith.constant 2 : index
    %c0_10 = arith.constant 0 : index
    %10 = vector.load %arg8[%c2, %c0_10] : memref<17x96xf32, #tpu.memory_space<vmem>>, vector<1x32xf32>
    %c3 = arith.constant 3 : index
    %c0_11 = arith.constant 0 : index
    %11 = vector.load %arg8[%c3, %c0_11] : memref<17x96xf32, #tpu.memory_space<vmem>>, vector<1x64xf32>
    %c4 = arith.constant 4 : index
    %c0_12 = arith.constant 0 : index
    %12 = vector.load %arg8[%c4, %c0_12] : memref<17x96xf32, #tpu.memory_space<vmem>>, vector<1x32xf32>
    %c5 = arith.constant 5 : index
    %c0_13 = arith.constant 0 : index
    %13 = vector.load %arg8[%c5, %c0_13] : memref<17x96xf32, #tpu.memory_space<vmem>>, vector<1x32xf32>
    %c6 = arith.constant 6 : index
    %c0_14 = arith.constant 0 : index
    %14 = vector.load %arg8[%c6, %c0_14] : memref<17x96xf32, #tpu.memory_space<vmem>>, vector<1x32xf32>
    %c7 = arith.constant 7 : index
    %c0_15 = arith.constant 0 : index
    %15 = vector.load %arg8[%c7, %c0_15] : memref<17x96xf32, #tpu.memory_space<vmem>>, vector<1x32xf32>
    %c8 = arith.constant 8 : index
    %c0_16 = arith.constant 0 : index
    %16 = vector.load %arg8[%c8, %c0_16] : memref<17x96xf32, #tpu.memory_space<vmem>>, vector<1x32xf32>
    %17 = arith.addf %8, %6 : vector<8x32xf32>
    %c0_17 = arith.constant 0 : index
    %c0_18 = arith.constant 0 : index
    %c0_19 = arith.constant 0 : index
    %18 = vector.load %arg4[%c0_17, %c0_18, %c0_19] : memref<2x32x96xf32, #tpu.memory_space<vmem>>, vector<1x32x96xf32>
    %19 = vector.shape_cast %18 : vector<1x32x96xf32> to vector<32x96xf32>
    %cst_20 = arith.constant dense<0.000000e+00> : vector<8x96xf32>
    %20 = tpu.matmul %17, %19, %cst_20 {dimension_numbers = #tpu.dot_dimension_numbers<[1], [0], [0], [1], [0, 0, 1, 1], [], []>} : vector<8x32xf32>, vector<32x96xf32>, vector<8x96xf32> -> vector<8x96xf32>
    %21 = vector.broadcast %9 : vector<1x96xf32> to vector<8x96xf32>
    %22 = arith.addf %20, %21 : vector<8x96xf32>
    %23 = vector.extract_strided_slice %22 {offsets = [0, 0], sizes = [8, 8], strides = [1, 1]} : vector<8x96xf32> to vector<8x8xf32>
    %24 = vector.extract_strided_slice %22 {offsets = [0, 8], sizes = [8, 8], strides = [1, 1]} : vector<8x96xf32> to vector<8x8xf32>
    %25 = vector.extract_strided_slice %22 {offsets = [0, 16], sizes = [8, 8], strides = [1, 1]} : vector<8x96xf32> to vector<8x8xf32>
    %26 = vector.extract_strided_slice %22 {offsets = [0, 24], sizes = [8, 8], strides = [1, 1]} : vector<8x96xf32> to vector<8x8xf32>
    %27 = vector.shape_cast %23 : vector<8x8xf32> to vector<1x8x8xf32>
    %28 = vector.shape_cast %24 : vector<8x8xf32> to vector<1x8x8xf32>
    %29 = vector.shape_cast %25 : vector<8x8xf32> to vector<1x8x8xf32>
    %30 = vector.shape_cast %26 : vector<8x8xf32> to vector<1x8x8xf32>
    %31 = tpu.concatenate %27, %28, %29, %30 in 0 : vector<1x8x8xf32>, vector<1x8x8xf32>, vector<1x8x8xf32>, vector<1x8x8xf32> -> vector<4x8x8xf32>
    %32 = vector.extract_strided_slice %22 {offsets = [0, 32], sizes = [8, 8], strides = [1, 1]} : vector<8x96xf32> to vector<8x8xf32>
    %33 = vector.extract_strided_slice %22 {offsets = [0, 40], sizes = [8, 8], strides = [1, 1]} : vector<8x96xf32> to vector<8x8xf32>
    %34 = vector.extract_strided_slice %22 {offsets = [0, 48], sizes = [8, 8], strides = [1, 1]} : vector<8x96xf32> to vector<8x8xf32>
    %35 = vector.extract_strided_slice %22 {offsets = [0, 56], sizes = [8, 8], strides = [1, 1]} : vector<8x96xf32> to vector<8x8xf32>
    %36 = vector.shape_cast %32 : vector<8x8xf32> to vector<1x8x8xf32>
    %37 = vector.shape_cast %33 : vector<8x8xf32> to vector<1x8x8xf32>
    %38 = vector.shape_cast %34 : vector<8x8xf32> to vector<1x8x8xf32>
    %39 = vector.shape_cast %35 : vector<8x8xf32> to vector<1x8x8xf32>
    %40 = tpu.concatenate %36, %37, %38, %39 in 0 : vector<1x8x8xf32>, vector<1x8x8xf32>, vector<1x8x8xf32>, vector<1x8x8xf32> -> vector<4x8x8xf32>
    %41 = vector.extract_strided_slice %22 {offsets = [0, 64], sizes = [8, 8], strides = [1, 1]} : vector<8x96xf32> to vector<8x8xf32>
    %42 = vector.extract_strided_slice %22 {offsets = [0, 72], sizes = [8, 8], strides = [1, 1]} : vector<8x96xf32> to vector<8x8xf32>
    %43 = vector.extract_strided_slice %22 {offsets = [0, 80], sizes = [8, 8], strides = [1, 1]} : vector<8x96xf32> to vector<8x8xf32>
    %44 = vector.extract_strided_slice %22 {offsets = [0, 88], sizes = [8, 8], strides = [1, 1]} : vector<8x96xf32> to vector<8x8xf32>
    %45 = vector.shape_cast %41 : vector<8x8xf32> to vector<1x8x8xf32>
    %46 = vector.shape_cast %42 : vector<8x8xf32> to vector<1x8x8xf32>
    %47 = vector.shape_cast %43 : vector<8x8xf32> to vector<1x8x8xf32>
    %48 = vector.shape_cast %44 : vector<8x8xf32> to vector<1x8x8xf32>
    %49 = tpu.concatenate %45, %46, %47, %48 in 0 : vector<1x8x8xf32>, vector<1x8x8xf32>, vector<1x8x8xf32>, vector<1x8x8xf32> -> vector<4x8x8xf32>
    "tpu.trace_start"() <{level = 10 : i32, message = "hsd,htd->hst"}> : () -> ()
    %cst_21 = arith.constant dense<0.000000e+00> : vector<4x8x8xf32>
    %50 = tpu.matmul %31, %40, %cst_21 {dimension_numbers = #tpu.dot_dimension_numbers<[2], [2], [1], [1], [0, 0, 0, 1, 1, 1], [0], [0]>} : vector<4x8x8xf32>, vector<4x8x8xf32>, vector<4x8x8xf32> -> vector<4x8x8xf32>
    "tpu.trace_stop"() : () -> ()
    %cst_22 = arith.constant dense<0xFF800000> : vector<4x8xf32>
    %51 = vector.multi_reduction <maximumf>, %50, %cst_22 [2] : vector<4x8x8xf32> to vector<4x8xf32>
    %52 = vector.shape_cast %51 : vector<4x8xf32> to vector<4x8x1xf32>
    %53 = vector.broadcast %52 : vector<4x8x1xf32> to vector<4x8x8xf32>
    %54 = arith.subf %50, %53 : vector<4x8x8xf32>
    %55 = math.exp %54 : vector<4x8x8xf32>
    %cst_23 = arith.constant dense<0.000000e+00> : vector<4x8xf32>
    %56 = vector.multi_reduction <add>, %55, %cst_23 [2] : vector<4x8x8xf32> to vector<4x8xf32>
    %57 = vector.shape_cast %56 : vector<4x8xf32> to vector<4x8x1xf32>
    %58 = vector.broadcast %57 : vector<4x8x1xf32> to vector<4x8x8xf32>
    %59 = arith.divf %55, %58 : vector<4x8x8xf32>
    "tpu.trace_start"() <{level = 10 : i32, message = "hst,htd->hsd"}> : () -> ()
    %cst_24 = arith.constant dense<0.000000e+00> : vector<4x8x8xf32>
    %60 = tpu.matmul %59, %49, %cst_24 {dimension_numbers = #tpu.dot_dimension_numbers<[2], [1], [1], [2], [0, 0, 0, 1, 1, 2], [0], [0]>} : vector<4x8x8xf32>, vector<4x8x8xf32>, vector<4x8x8xf32> -> vector<4x8x8xf32>
    "tpu.trace_stop"() : () -> ()
    %61 = vector.extract_strided_slice %60 {offsets = [0, 0, 0], sizes = [1, 8, 8], strides = [1, 1, 1]} : vector<4x8x8xf32> to vector<1x8x8xf32>
    %62 = vector.shape_cast %61 : vector<1x8x8xf32> to vector<8x8xf32>
    %63 = vector.extract_strided_slice %60 {offsets = [1, 0, 0], sizes = [1, 8, 8], strides = [1, 1, 1]} : vector<4x8x8xf32> to vector<1x8x8xf32>
    %64 = vector.shape_cast %63 : vector<1x8x8xf32> to vector<8x8xf32>
    %65 = vector.extract_strided_slice %60 {offsets = [2, 0, 0], sizes = [1, 8, 8], strides = [1, 1, 1]} : vector<4x8x8xf32> to vector<1x8x8xf32>
    %66 = vector.shape_cast %65 : vector<1x8x8xf32> to vector<8x8xf32>
    %67 = vector.extract_strided_slice %60 {offsets = [3, 0, 0], sizes = [1, 8, 8], strides = [1, 1, 1]} : vector<4x8x8xf32> to vector<1x8x8xf32>
    %68 = vector.shape_cast %67 : vector<1x8x8xf32> to vector<8x8xf32>
    %69 = tpu.concatenate %62, %64, %66, %68 in 1 : vector<8x8xf32>, vector<8x8xf32>, vector<8x8xf32>, vector<8x8xf32> -> vector<8x32xf32>
    %c0_25 = arith.constant 0 : index
    %c0_26 = arith.constant 0 : index
    %c0_27 = arith.constant 0 : index
    %70 = vector.load %arg5[%c0_25, %c0_26, %c0_27] : memref<2x32x32xf32, #tpu.memory_space<vmem>>, vector<1x32x32xf32>
    %71 = vector.shape_cast %70 : vector<1x32x32xf32> to vector<32x32xf32>
    %cst_28 = arith.constant dense<0.000000e+00> : vector<8x32xf32>
    %72 = tpu.matmul %69, %71, %cst_28 {dimension_numbers = #tpu.dot_dimension_numbers<[1], [0], [0], [1], [0, 0, 1, 1], [], []>} : vector<8x32xf32>, vector<32x32xf32>, vector<8x32xf32> -> vector<8x32xf32>
    %73 = vector.broadcast %10 : vector<1x32xf32> to vector<8x32xf32>
    %74 = arith.addf %72, %73 : vector<8x32xf32>
    %75 = arith.addf %17, %74 : vector<8x32xf32>
    %cst_29 = arith.constant dense<0.000000e+00> : vector<8xf32>
    %76 = vector.multi_reduction <add>, %75, %cst_29 [1] : vector<8x32xf32> to vector<8xf32>
    %77 = vector.shape_cast %76 : vector<8xf32> to vector<8x1xf32>
    %cst_30 = arith.constant 3.200000e+01 : f32
    %78 = vector.broadcast %cst_30 : f32 to vector<8x1xf32>
    %79 = arith.divf %77, %78 : vector<8x1xf32>
    %80 = vector.broadcast %79 : vector<8x1xf32> to vector<8x32xf32>
    %81 = arith.subf %75, %80 : vector<8x32xf32>
    %82 = arith.mulf %81, %81 : vector<8x32xf32>
    %cst_31 = arith.constant dense<0.000000e+00> : vector<8xf32>
    %83 = vector.multi_reduction <add>, %82, %cst_31 [1] : vector<8x32xf32> to vector<8xf32>
    %84 = vector.shape_cast %83 : vector<8xf32> to vector<8x1xf32>
    %cst_32 = arith.constant 3.200000e+01 : f32
    %85 = vector.broadcast %cst_32 : f32 to vector<8x1xf32>
    %86 = arith.divf %84, %85 : vector<8x1xf32>
    %87 = vector.broadcast %79 : vector<8x1xf32> to vector<8x32xf32>
    %88 = arith.subf %75, %87 : vector<8x32xf32>
    %cst_33 = arith.constant 9.99999974E-6 : f32
    %89 = vector.broadcast %cst_33 : f32 to vector<8x1xf32>
    %90 = arith.addf %86, %89 : vector<8x1xf32>
    %91 = math.rsqrt %90 : vector<8x1xf32>
    %92 = vector.broadcast %91 : vector<8x1xf32> to vector<8x32xf32>
    %93 = arith.mulf %88, %92 : vector<8x32xf32>
    %94 = vector.broadcast %13 : vector<1x32xf32> to vector<8x32xf32>
    %95 = arith.mulf %93, %94 : vector<8x32xf32>
    %96 = vector.broadcast %14 : vector<1x32xf32> to vector<8x32xf32>
    %97 = arith.addf %95, %96 : vector<8x32xf32>
    %c0_34 = arith.constant 0 : index
    %c0_35 = arith.constant 0 : index
    %c0_36 = arith.constant 0 : index
    %98 = vector.load %arg6[%c0_34, %c0_35, %c0_36] : memref<2x32x64xf32, #tpu.memory_space<vmem>>, vector<1x32x64xf32>
    %99 = vector.shape_cast %98 : vector<1x32x64xf32> to vector<32x64xf32>
    %cst_37 = arith.constant dense<0.000000e+00> : vector<8x64xf32>
    %100 = tpu.matmul %97, %99, %cst_37 {dimension_numbers = #tpu.dot_dimension_numbers<[1], [0], [0], [1], [0, 0, 1, 1], [], []>} : vector<8x32xf32>, vector<32x64xf32>, vector<8x64xf32> -> vector<8x64xf32>
    %101 = vector.broadcast %11 : vector<1x64xf32> to vector<8x64xf32>
    %102 = arith.addf %100, %101 : vector<8x64xf32>
    %cst_38 = arith.constant 0.000000e+00 : f32
    %103 = vector.broadcast %cst_38 : f32 to vector<8x64xf32>
    %104 = arith.maximumf %102, %103 : vector<8x64xf32>
    %c0_39 = arith.constant 0 : index
    %c0_40 = arith.constant 0 : index
    %c0_41 = arith.constant 0 : index
    %105 = vector.load %arg7[%c0_39, %c0_40, %c0_41] : memref<2x64x32xf32, #tpu.memory_space<vmem>>, vector<1x64x32xf32>
    %106 = vector.shape_cast %105 : vector<1x64x32xf32> to vector<64x32xf32>
    %cst_42 = arith.constant dense<0.000000e+00> : vector<8x32xf32>
    %107 = tpu.matmul %104, %106, %cst_42 {dimension_numbers = #tpu.dot_dimension_numbers<[1], [0], [0], [1], [0, 0, 1, 1], [], []>} : vector<8x64xf32>, vector<64x32xf32>, vector<8x32xf32> -> vector<8x32xf32>
    %108 = vector.broadcast %12 : vector<1x32xf32> to vector<8x32xf32>
    %109 = arith.addf %107, %108 : vector<8x32xf32>
    %110 = arith.addf %97, %109 : vector<8x32xf32>
    %cst_43 = arith.constant dense<0.000000e+00> : vector<8xf32>
    %111 = vector.multi_reduction <add>, %110, %cst_43 [1] : vector<8x32xf32> to vector<8xf32>
    %112 = vector.shape_cast %111 : vector<8xf32> to vector<8x1xf32>
    %cst_44 = arith.constant 3.200000e+01 : f32
    %113 = vector.broadcast %cst_44 : f32 to vector<8x1xf32>
    %114 = arith.divf %112, %113 : vector<8x1xf32>
    %115 = vector.broadcast %114 : vector<8x1xf32> to vector<8x32xf32>
    %116 = arith.subf %110, %115 : vector<8x32xf32>
    %117 = arith.mulf %116, %116 : vector<8x32xf32>
    %cst_45 = arith.constant dense<0.000000e+00> : vector<8xf32>
    %118 = vector.multi_reduction <add>, %117, %cst_45 [1] : vector<8x32xf32> to vector<8xf32>
    %119 = vector.shape_cast %118 : vector<8xf32> to vector<8x1xf32>
    %cst_46 = arith.constant 3.200000e+01 : f32
    %120 = vector.broadcast %cst_46 : f32 to vector<8x1xf32>
    %121 = arith.divf %119, %120 : vector<8x1xf32>
    %122 = vector.broadcast %114 : vector<8x1xf32> to vector<8x32xf32>
    %123 = arith.subf %110, %122 : vector<8x32xf32>
    %cst_47 = arith.constant 9.99999974E-6 : f32
    %124 = vector.broadcast %cst_47 : f32 to vector<8x1xf32>
    %125 = arith.addf %121, %124 : vector<8x1xf32>
    %126 = math.rsqrt %125 : vector<8x1xf32>
    %127 = vector.broadcast %126 : vector<8x1xf32> to vector<8x32xf32>
    %128 = arith.mulf %123, %127 : vector<8x32xf32>
    %129 = vector.broadcast %15 : vector<1x32xf32> to vector<8x32xf32>
    %130 = arith.mulf %128, %129 : vector<8x32xf32>
    %131 = vector.broadcast %16 : vector<1x32xf32> to vector<8x32xf32>
    %132 = arith.addf %130, %131 : vector<8x32xf32>
    %c9 = arith.constant 9 : index
    %c0_48 = arith.constant 0 : index
    %133 = vector.load %arg8[%c9, %c0_48] : memref<17x96xf32, #tpu.memory_space<vmem>>, vector<1x96xf32>
    %c10 = arith.constant 10 : index
    %c0_49 = arith.constant 0 : index
    %134 = vector.load %arg8[%c10, %c0_49] : memref<17x96xf32, #tpu.memory_space<vmem>>, vector<1x32xf32>
    %c11 = arith.constant 11 : index
    %c0_50 = arith.constant 0 : index
    %135 = vector.load %arg8[%c11, %c0_50] : memref<17x96xf32, #tpu.memory_space<vmem>>, vector<1x64xf32>
    %c12 = arith.constant 12 : index
    %c0_51 = arith.constant 0 : index
    %136 = vector.load %arg8[%c12, %c0_51] : memref<17x96xf32, #tpu.memory_space<vmem>>, vector<1x32xf32>
    %c13 = arith.constant 13 : index
    %c0_52 = arith.constant 0 : index
    %137 = vector.load %arg8[%c13, %c0_52] : memref<17x96xf32, #tpu.memory_space<vmem>>, vector<1x32xf32>
    %c14 = arith.constant 14 : index
    %c0_53 = arith.constant 0 : index
    %138 = vector.load %arg8[%c14, %c0_53] : memref<17x96xf32, #tpu.memory_space<vmem>>, vector<1x32xf32>
    %c15 = arith.constant 15 : index
    %c0_54 = arith.constant 0 : index
    %139 = vector.load %arg8[%c15, %c0_54] : memref<17x96xf32, #tpu.memory_space<vmem>>, vector<1x32xf32>
    %c16 = arith.constant 16 : index
    %c0_55 = arith.constant 0 : index
    %140 = vector.load %arg8[%c16, %c0_55] : memref<17x96xf32, #tpu.memory_space<vmem>>, vector<1x32xf32>
    %141 = arith.addf %132, %6 : vector<8x32xf32>
    %c1_56 = arith.constant 1 : index
    %c0_57 = arith.constant 0 : index
    %c0_58 = arith.constant 0 : index
    %142 = vector.load %arg4[%c1_56, %c0_57, %c0_58] : memref<2x32x96xf32, #tpu.memory_space<vmem>>, vector<1x32x96xf32>
    %143 = vector.shape_cast %142 : vector<1x32x96xf32> to vector<32x96xf32>
    %cst_59 = arith.constant dense<0.000000e+00> : vector<8x96xf32>
    %144 = tpu.matmul %141, %143, %cst_59 {dimension_numbers = #tpu.dot_dimension_numbers<[1], [0], [0], [1], [0, 0, 1, 1], [], []>} : vector<8x32xf32>, vector<32x96xf32>, vector<8x96xf32> -> vector<8x96xf32>
    %145 = vector.broadcast %133 : vector<1x96xf32> to vector<8x96xf32>
    %146 = arith.addf %144, %145 : vector<8x96xf32>
    %147 = vector.extract_strided_slice %146 {offsets = [0, 0], sizes = [8, 8], strides = [1, 1]} : vector<8x96xf32> to vector<8x8xf32>
    %148 = vector.extract_strided_slice %146 {offsets = [0, 8], sizes = [8, 8], strides = [1, 1]} : vector<8x96xf32> to vector<8x8xf32>
    %149 = vector.extract_strided_slice %146 {offsets = [0, 16], sizes = [8, 8], strides = [1, 1]} : vector<8x96xf32> to vector<8x8xf32>
    %150 = vector.extract_strided_slice %146 {offsets = [0, 24], sizes = [8, 8], strides = [1, 1]} : vector<8x96xf32> to vector<8x8xf32>
    %151 = vector.shape_cast %147 : vector<8x8xf32> to vector<1x8x8xf32>
    %152 = vector.shape_cast %148 : vector<8x8xf32> to vector<1x8x8xf32>
    %153 = vector.shape_cast %149 : vector<8x8xf32> to vector<1x8x8xf32>
    %154 = vector.shape_cast %150 : vector<8x8xf32> to vector<1x8x8xf32>
    %155 = tpu.concatenate %151, %152, %153, %154 in 0 : vector<1x8x8xf32>, vector<1x8x8xf32>, vector<1x8x8xf32>, vector<1x8x8xf32> -> vector<4x8x8xf32>
    %156 = vector.extract_strided_slice %146 {offsets = [0, 32], sizes = [8, 8], strides = [1, 1]} : vector<8x96xf32> to vector<8x8xf32>
    %157 = vector.extract_strided_slice %146 {offsets = [0, 40], sizes = [8, 8], strides = [1, 1]} : vector<8x96xf32> to vector<8x8xf32>
    %158 = vector.extract_strided_slice %146 {offsets = [0, 48], sizes = [8, 8], strides = [1, 1]} : vector<8x96xf32> to vector<8x8xf32>
    %159 = vector.extract_strided_slice %146 {offsets = [0, 56], sizes = [8, 8], strides = [1, 1]} : vector<8x96xf32> to vector<8x8xf32>
    %160 = vector.shape_cast %156 : vector<8x8xf32> to vector<1x8x8xf32>
    %161 = vector.shape_cast %157 : vector<8x8xf32> to vector<1x8x8xf32>
    %162 = vector.shape_cast %158 : vector<8x8xf32> to vector<1x8x8xf32>
    %163 = vector.shape_cast %159 : vector<8x8xf32> to vector<1x8x8xf32>
    %164 = tpu.concatenate %160, %161, %162, %163 in 0 : vector<1x8x8xf32>, vector<1x8x8xf32>, vector<1x8x8xf32>, vector<1x8x8xf32> -> vector<4x8x8xf32>
    %165 = vector.extract_strided_slice %146 {offsets = [0, 64], sizes = [8, 8], strides = [1, 1]} : vector<8x96xf32> to vector<8x8xf32>
    %166 = vector.extract_strided_slice %146 {offsets = [0, 72], sizes = [8, 8], strides = [1, 1]} : vector<8x96xf32> to vector<8x8xf32>
    %167 = vector.extract_strided_slice %146 {offsets = [0, 80], sizes = [8, 8], strides = [1, 1]} : vector<8x96xf32> to vector<8x8xf32>
    %168 = vector.extract_strided_slice %146 {offsets = [0, 88], sizes = [8, 8], strides = [1, 1]} : vector<8x96xf32> to vector<8x8xf32>
    %169 = vector.shape_cast %165 : vector<8x8xf32> to vector<1x8x8xf32>
    %170 = vector.shape_cast %166 : vector<8x8xf32> to vector<1x8x8xf32>
    %171 = vector.shape_cast %167 : vector<8x8xf32> to vector<1x8x8xf32>
    %172 = vector.shape_cast %168 : vector<8x8xf32> to vector<1x8x8xf32>
    %173 = tpu.concatenate %169, %170, %171, %172 in 0 : vector<1x8x8xf32>, vector<1x8x8xf32>, vector<1x8x8xf32>, vector<1x8x8xf32> -> vector<4x8x8xf32>
    "tpu.trace_start"() <{level = 10 : i32, message = "hsd,htd->hst"}> : () -> ()
    %cst_60 = arith.constant dense<0.000000e+00> : vector<4x8x8xf32>
    %174 = tpu.matmul %155, %164, %cst_60 {dimension_numbers = #tpu.dot_dimension_numbers<[2], [2], [1], [1], [0, 0, 0, 1, 1, 1], [0], [0]>} : vector<4x8x8xf32>, vector<4x8x8xf32>, vector<4x8x8xf32> -> vector<4x8x8xf32>
    "tpu.trace_stop"() : () -> ()
    %cst_61 = arith.constant dense<0xFF800000> : vector<4x8xf32>
    %175 = vector.multi_reduction <maximumf>, %174, %cst_61 [2] : vector<4x8x8xf32> to vector<4x8xf32>
    %176 = vector.shape_cast %175 : vector<4x8xf32> to vector<4x8x1xf32>
    %177 = vector.broadcast %176 : vector<4x8x1xf32> to vector<4x8x8xf32>
    %178 = arith.subf %174, %177 : vector<4x8x8xf32>
    %179 = math.exp %178 : vector<4x8x8xf32>
    %cst_62 = arith.constant dense<0.000000e+00> : vector<4x8xf32>
    %180 = vector.multi_reduction <add>, %179, %cst_62 [2] : vector<4x8x8xf32> to vector<4x8xf32>
    %181 = vector.shape_cast %180 : vector<4x8xf32> to vector<4x8x1xf32>
    %182 = vector.broadcast %181 : vector<4x8x1xf32> to vector<4x8x8xf32>
    %183 = arith.divf %179, %182 : vector<4x8x8xf32>
    "tpu.trace_start"() <{level = 10 : i32, message = "hst,htd->hsd"}> : () -> ()
    %cst_63 = arith.constant dense<0.000000e+00> : vector<4x8x8xf32>
    %184 = tpu.matmul %183, %173, %cst_63 {dimension_numbers = #tpu.dot_dimension_numbers<[2], [1], [1], [2], [0, 0, 0, 1, 1, 2], [0], [0]>} : vector<4x8x8xf32>, vector<4x8x8xf32>, vector<4x8x8xf32> -> vector<4x8x8xf32>
    "tpu.trace_stop"() : () -> ()
    %185 = vector.extract_strided_slice %184 {offsets = [0, 0, 0], sizes = [1, 8, 8], strides = [1, 1, 1]} : vector<4x8x8xf32> to vector<1x8x8xf32>
    %186 = vector.shape_cast %185 : vector<1x8x8xf32> to vector<8x8xf32>
    %187 = vector.extract_strided_slice %184 {offsets = [1, 0, 0], sizes = [1, 8, 8], strides = [1, 1, 1]} : vector<4x8x8xf32> to vector<1x8x8xf32>
    %188 = vector.shape_cast %187 : vector<1x8x8xf32> to vector<8x8xf32>
    %189 = vector.extract_strided_slice %184 {offsets = [2, 0, 0], sizes = [1, 8, 8], strides = [1, 1, 1]} : vector<4x8x8xf32> to vector<1x8x8xf32>
    %190 = vector.shape_cast %189 : vector<1x8x8xf32> to vector<8x8xf32>
    %191 = vector.extract_strided_slice %184 {offsets = [3, 0, 0], sizes = [1, 8, 8], strides = [1, 1, 1]} : vector<4x8x8xf32> to vector<1x8x8xf32>
    %192 = vector.shape_cast %191 : vector<1x8x8xf32> to vector<8x8xf32>
    %193 = tpu.concatenate %186, %188, %190, %192 in 1 : vector<8x8xf32>, vector<8x8xf32>, vector<8x8xf32>, vector<8x8xf32> -> vector<8x32xf32>
    %c1_64 = arith.constant 1 : index
    %c0_65 = arith.constant 0 : index
    %c0_66 = arith.constant 0 : index
    %194 = vector.load %arg5[%c1_64, %c0_65, %c0_66] : memref<2x32x32xf32, #tpu.memory_space<vmem>>, vector<1x32x32xf32>
    %195 = vector.shape_cast %194 : vector<1x32x32xf32> to vector<32x32xf32>
    %cst_67 = arith.constant dense<0.000000e+00> : vector<8x32xf32>
    %196 = tpu.matmul %193, %195, %cst_67 {dimension_numbers = #tpu.dot_dimension_numbers<[1], [0], [0], [1], [0, 0, 1, 1], [], []>} : vector<8x32xf32>, vector<32x32xf32>, vector<8x32xf32> -> vector<8x32xf32>
    %197 = vector.broadcast %134 : vector<1x32xf32> to vector<8x32xf32>
    %198 = arith.addf %196, %197 : vector<8x32xf32>
    %199 = arith.addf %141, %198 : vector<8x32xf32>
    %cst_68 = arith.constant dense<0.000000e+00> : vector<8xf32>
    %200 = vector.multi_reduction <add>, %199, %cst_68 [1] : vector<8x32xf32> to vector<8xf32>
    %201 = vector.shape_cast %200 : vector<8xf32> to vector<8x1xf32>
    %cst_69 = arith.constant 3.200000e+01 : f32
    %202 = vector.broadcast %cst_69 : f32 to vector<8x1xf32>
    %203 = arith.divf %201, %202 : vector<8x1xf32>
    %204 = vector.broadcast %203 : vector<8x1xf32> to vector<8x32xf32>
    %205 = arith.subf %199, %204 : vector<8x32xf32>
    %206 = arith.mulf %205, %205 : vector<8x32xf32>
    %cst_70 = arith.constant dense<0.000000e+00> : vector<8xf32>
    %207 = vector.multi_reduction <add>, %206, %cst_70 [1] : vector<8x32xf32> to vector<8xf32>
    %208 = vector.shape_cast %207 : vector<8xf32> to vector<8x1xf32>
    %cst_71 = arith.constant 3.200000e+01 : f32
    %209 = vector.broadcast %cst_71 : f32 to vector<8x1xf32>
    %210 = arith.divf %208, %209 : vector<8x1xf32>
    %211 = vector.broadcast %203 : vector<8x1xf32> to vector<8x32xf32>
    %212 = arith.subf %199, %211 : vector<8x32xf32>
    %cst_72 = arith.constant 9.99999974E-6 : f32
    %213 = vector.broadcast %cst_72 : f32 to vector<8x1xf32>
    %214 = arith.addf %210, %213 : vector<8x1xf32>
    %215 = math.rsqrt %214 : vector<8x1xf32>
    %216 = vector.broadcast %215 : vector<8x1xf32> to vector<8x32xf32>
    %217 = arith.mulf %212, %216 : vector<8x32xf32>
    %218 = vector.broadcast %137 : vector<1x32xf32> to vector<8x32xf32>
    %219 = arith.mulf %217, %218 : vector<8x32xf32>
    %220 = vector.broadcast %138 : vector<1x32xf32> to vector<8x32xf32>
    %221 = arith.addf %219, %220 : vector<8x32xf32>
    %c1_73 = arith.constant 1 : index
    %c0_74 = arith.constant 0 : index
    %c0_75 = arith.constant 0 : index
    %222 = vector.load %arg6[%c1_73, %c0_74, %c0_75] : memref<2x32x64xf32, #tpu.memory_space<vmem>>, vector<1x32x64xf32>
    %223 = vector.shape_cast %222 : vector<1x32x64xf32> to vector<32x64xf32>
    %cst_76 = arith.constant dense<0.000000e+00> : vector<8x64xf32>
    %224 = tpu.matmul %221, %223, %cst_76 {dimension_numbers = #tpu.dot_dimension_numbers<[1], [0], [0], [1], [0, 0, 1, 1], [], []>} : vector<8x32xf32>, vector<32x64xf32>, vector<8x64xf32> -> vector<8x64xf32>
    %225 = vector.broadcast %135 : vector<1x64xf32> to vector<8x64xf32>
    %226 = arith.addf %224, %225 : vector<8x64xf32>
    %cst_77 = arith.constant 0.000000e+00 : f32
    %227 = vector.broadcast %cst_77 : f32 to vector<8x64xf32>
    %228 = arith.maximumf %226, %227 : vector<8x64xf32>
    %c1_78 = arith.constant 1 : index
    %c0_79 = arith.constant 0 : index
    %c0_80 = arith.constant 0 : index
    %229 = vector.load %arg7[%c1_78, %c0_79, %c0_80] : memref<2x64x32xf32, #tpu.memory_space<vmem>>, vector<1x64x32xf32>
    %230 = vector.shape_cast %229 : vector<1x64x32xf32> to vector<64x32xf32>
    %cst_81 = arith.constant dense<0.000000e+00> : vector<8x32xf32>
    %231 = tpu.matmul %228, %230, %cst_81 {dimension_numbers = #tpu.dot_dimension_numbers<[1], [0], [0], [1], [0, 0, 1, 1], [], []>} : vector<8x64xf32>, vector<64x32xf32>, vector<8x32xf32> -> vector<8x32xf32>
    %232 = vector.broadcast %136 : vector<1x32xf32> to vector<8x32xf32>
    %233 = arith.addf %231, %232 : vector<8x32xf32>
    %234 = arith.addf %221, %233 : vector<8x32xf32>
    %cst_82 = arith.constant dense<0.000000e+00> : vector<8xf32>
    %235 = vector.multi_reduction <add>, %234, %cst_82 [1] : vector<8x32xf32> to vector<8xf32>
    %236 = vector.shape_cast %235 : vector<8xf32> to vector<8x1xf32>
    %cst_83 = arith.constant 3.200000e+01 : f32
    %237 = vector.broadcast %cst_83 : f32 to vector<8x1xf32>
    %238 = arith.divf %236, %237 : vector<8x1xf32>
    %239 = vector.broadcast %238 : vector<8x1xf32> to vector<8x32xf32>
    %240 = arith.subf %234, %239 : vector<8x32xf32>
    %241 = arith.mulf %240, %240 : vector<8x32xf32>
    %cst_84 = arith.constant dense<0.000000e+00> : vector<8xf32>
    %242 = vector.multi_reduction <add>, %241, %cst_84 [1] : vector<8x32xf32> to vector<8xf32>
    %243 = vector.shape_cast %242 : vector<8xf32> to vector<8x1xf32>
    %cst_85 = arith.constant 3.200000e+01 : f32
    %244 = vector.broadcast %cst_85 : f32 to vector<8x1xf32>
    %245 = arith.divf %243, %244 : vector<8x1xf32>
    %246 = vector.broadcast %238 : vector<8x1xf32> to vector<8x32xf32>
    %247 = arith.subf %234, %246 : vector<8x32xf32>
    %cst_86 = arith.constant 9.99999974E-6 : f32
    %248 = vector.broadcast %cst_86 : f32 to vector<8x1xf32>
    %249 = arith.addf %245, %248 : vector<8x1xf32>
    %250 = math.rsqrt %249 : vector<8x1xf32>
    %251 = vector.broadcast %250 : vector<8x1xf32> to vector<8x32xf32>
    %252 = arith.mulf %247, %251 : vector<8x32xf32>
    %253 = vector.broadcast %139 : vector<1x32xf32> to vector<8x32xf32>
    %254 = arith.mulf %252, %253 : vector<8x32xf32>
    %255 = vector.broadcast %140 : vector<1x32xf32> to vector<8x32xf32>
    %256 = arith.addf %254, %255 : vector<8x32xf32>
    %257 = vector.shape_cast %256 : vector<8x32xf32> to vector<1x8x32xf32>
    %c0_87 = arith.constant 0 : index
    %c0_88 = arith.constant 0 : index
    %c0_89 = arith.constant 0 : index
    %258 = vector.load %arg9[%c0_87, %c0_88, %c0_89] : memref<1x8x32xf32, #tpu.memory_space<vmem>>, vector<1x8x32xf32>
    tpu.vector_store %arg9[%c0_87, %c0_88, %c0_89], %257 {strides = array<i32>} : memref<1x8x32xf32, #tpu.memory_space<vmem>>, vector<1x8x32xf32>,
    return
  }
  func.func @transform_0(%arg0: i32) -> (i32, i32, i32) {
    %c0_i32 = arith.constant 0 : i32
    %c0_i32_0 = arith.constant 0 : i32
    %c0_i32_1 = arith.constant 0 : i32
    return %arg0, %c0_i32, %c0_i32_0 : i32, i32, i32
  }
  func.func @transform_1(%arg0: i32) -> (i32, i32, i32) {
    %c0_i32 = arith.constant 0 : i32
    %c0_i32_0 = arith.constant 0 : i32
    %c0_i32_1 = arith.constant 0 : i32
    return %arg0, %c0_i32, %c0_i32_0 : i32, i32, i32
  }
  func.func @transform_2(%arg0: i32) -> (i32, i32) {
    %c0_i32 = arith.constant 0 : i32
    %c0_i32_0 = arith.constant 0 : i32
    %c0_i32_1 = arith.constant 0 : i32
    return %c0_i32, %c0_i32_0 : i32, i32
  }
  func.func @transform_3(%arg0: i32) -> (i32, i32, i32) {
    %c0_i32 = arith.constant 0 : i32
    %c0_i32_0 = arith.constant 0 : i32
    %c0_i32_1 = arith.constant 0 : i32
    %c0_i32_2 = arith.constant 0 : i32
    return %c0_i32, %c0_i32_0, %c0_i32_1 : i32, i32, i32
  }
  func.func @transform_4(%arg0: i32) -> (i32, i32, i32) {
    %c0_i32 = arith.constant 0 : i32
    %c0_i32_0 = arith.constant 0 : i32
    %c0_i32_1 = arith.constant 0 : i32
    %c0_i32_2 = arith.constant 0 : i32
    return %c0_i32, %c0_i32_0, %c0_i32_1 : i32, i32, i32
  }
  func.func @transform_5(%arg0: i32) -> (i32, i32, i32) {
    %c0_i32 = arith.constant 0 : i32
    %c0_i32_0 = arith.constant 0 : i32
    %c0_i32_1 = arith.constant 0 : i32
    %c0_i32_2 = arith.constant 0 : i32
    return %c0_i32, %c0_i32_0, %c0_i32_1 : i32, i32, i32
  }
  func.func @transform_6(%arg0: i32) -> (i32, i32, i32) {
    %c0_i32 = arith.constant 0 : i32
    %c0_i32_0 = arith.constant 0 : i32
    %c0_i32_1 = arith.constant 0 : i32
    %c0_i32_2 = arith.constant 0 : i32
    return %c0_i32, %c0_i32_0, %c0_i32_1 : i32, i32, i32
  }
  func.func @transform_7(%arg0: i32) -> (i32, i32) {
    %c0_i32 = arith.constant 0 : i32
    %c0_i32_0 = arith.constant 0 : i32
    %c0_i32_1 = arith.constant 0 : i32
    return %c0_i32, %c0_i32_0 : i32, i32
  }
  func.func @transform_8(%arg0: i32) -> (i32, i32, i32) {
    %c0_i32 = arith.constant 0 : i32
    %c0_i32_0 = arith.constant 0 : i32
    %c0_i32_1 = arith.constant 0 : i32
    return %arg0, %c0_i32, %c0_i32_0 : i32, i32, i32
  }
}

</mosaic_0001>

<bundles_post_ra>
// kernel: in_attention_encoder.1
= control target key start
LH: loop header
LB: loop body
LE: loop exit
PB: predicated region body
PF: predicated region fallthrough
CT: control target
= control target key end

     0   :  { %13 = vsyncpa [#allocation3], 0  ;;  %s3749_s0 = inlined_call_operand.vmem [shape: f32[2,8,32], index: 0, kind: input, shape index: {}]   ;;  %s3750_s1 = inlined_call_operand.vmem [shape: f32[2,8,18], index: 1, kind: input, shape index: {}]   ;;  %s3751_s2 = inlined_call_operand.vmem [shape: f32[18,32], index: 2, kind: input, shape index: {}]   ;;  %s3752_s3 = inlined_call_operand.vmem [shape: f32[2,32,96], index: 3, kind: input, shape index: {}]   ;;  %s3753_s4 = inlined_call_operand.vmem [shape: f32[2,32,32], index: 4, kind: input, shape index: {}]   ;;  %s3754_s5 = inlined_call_operand.vmem [shape: f32[2,32,64], index: 5, kind: input, shape index: {}]   ;;  %s3755_s6 = inlined_call_operand.vmem [shape: f32[2,64,32], index: 6, kind: input, shape index: {}]   ;;  %s3756_s7 = inlined_call_operand.vmem [shape: f32[17,96], index: 7, kind: input, shape index: {}]   ;;  %s3757_s8 = inlined_call_operand.hbm [shape: f32[2,8,32], index: 8, kind: output, shape index: {}]  }
   0x1   :  { %15 = vsyncpa [#allocation3 + $0x1], 0  ;;  %s3255_s27 = smov 0   ;;  %s3257_s28 = smov 0  }
   0x2   :  { %s3259_s29 = smov 0   ;;  %s3261_s30 = smov 0  }
   0x3 LB: > { %s3276_s9 = sadd.s32 4294967295, %s3196_s30   ;;  %s2622_s10 = sadd.s32 4294967294, %s3196_s30   ;;  %s3196_s30 = sphi %s3261_s30, %s3775_s30   ;;  %s3192_s29 = sphi %s3259_s29, %s3774_s29   ;;  %s3188_s28 = sphi %s3257_s28, %s3773_s28   ;;  %s3184_s27 = sphi %s3255_s27, %s3772_s27  }
   0x4   : > { %s3280_s11 = sadd.s32 1, %s3196_s30   ;;  %s206_s12 = sadd.s32 1, %s3192_s29 }
   0x5   : > { %s203_s13 = ssub.s32 %s3196_s30, %s3280_s11  ;;  %p216_p0 = scmp.ne.s32.totalorder %s3192_s29, %s3188_s28 }
   0x6   : > { %p204_p1 = scmp.eq.s32.totalorder %s203_s13, 0  ;;  %p217_p2 = scmp.eq.s32.totalorder %s3276_s9, 1 }
   0x7   : > { %p222_p3 = scmp.ne.s32.totalorder %s3188_s28, %s3184_s27  ;;  %p223_p4 = scmp.eq.s32.totalorder %s2622_s10, 1 }
   0x8   : > { %s3291_s14 = scalar_select %p204_p1, %s3192_s29, %s206_s12  }
   0x9   : > { %p3293_p5 = por %p217_p2, %p216_p0  ;;  %p3297_p6 = por %p223_p4, %p222_p3 }
   0xa   : > { %p2625_p7 = scmp.ge.s32.totalorder %s3196_s30, 1  ;;  %p273_p8 = scmp.lt.s32.totalorder %s3196_s30, 3 }
   0xc   : > { %p274_p9 = pnand %p2625_p7, %p273_p8 }
   0xd   : > { %v320_v0 = vld [vmem:[%s3751_s2] sm:$0xff] (!%p274_p9)  ;;  %v321_v1 = vld [vmem:[%s3751_s2 + $0x8] sm:$0xff] (!%p274_p9)  ;;  %v3198_v2 = vmov (!%p274_p9), 0.0|0.0   ;;  %p310_p10 = scmp.lt.s32.totalorder (!%p274_p9), %s3276_s9, 1  ;;  %v3199_v4 = vmov (!%p274_p9), 0.0   ;;  %vm3200_vm0 = vmmov (!%p274_p9), 0  }
   0xe   : > { %277 = sbr.rel (%p274_p9) target bundleno = 5419 (0x152b), region = 52  ;;  %2981 = vmatprep.subr.bf16.mxu1 (!%p274_p9), %v3198_v2  ;;  %v2982_v3 = vpack.c.bf16 (!%p274_p9), %v321_v1, %v320_v0  ;;  %2808 = vmatprep.subr.mxu0 (!%p274_p9), %v3199_v4  ;;  %v415_v5 = vld [vmem:[%s3752_s3] sm:$0xff] (!%p274_p9)  ;;  %v416_v6 = vld [vmem:[%s3752_s3 + $0x8] sm:$0xff] (!%p274_p9)  ;;  %v322_v7 = vld [vmem:[%s3751_s2 + $0x10] sm:$0x3] (!%p274_p9)  ;;  %vm331_vm1 = vcmask (!%p274_p9), 1041408  }
   0xf   : > { %2794 = vmatprep.mubr.msk.f32.mxu1 (!%p274_p9), %vm3200_vm0, %v3199_v4  ;;  %2810 = vmatprep.mubr.msk.f32.mxu0 (!%p274_p9), %vm3200_vm0, %v3199_v4  ;;  %vm327_vm2 = vcmask (!%p274_p9), 146432   ;;  %v2985_v8 = vpack.c.bf16 (!%p274_p9), %v416_v6, %v415_v5  ;;  %v417_v10 = vld [vmem:[%s3752_s3 + $0x10] sm:$0xff] (!%p274_p9)  ;;  %v418_v11 = vld [vmem:[%s3752_s3 + $0x18] sm:$0xff] (!%p274_p9)  ;;  %v2629_v13 = vld [vmem:[%s3756_s7] ss:$0 sm:$0xff] (!%p274_p9)  ;;  %vm423_vm3 = vcmask (!%p274_p9), 261120  }
  0x10   : > { %2983 = vmatpush3.bf16.msra.mxu1 (!%p274_p9), %v2982_v3  ;;  %v2988_v12 = vpack.c.bf16 (!%p274_p9), %v418_v11, %v417_v10  ;;  %v2632_v19 = vld [vmem:[%s3756_s7 + $0x1] ss:$0 sm:$0xff] (!%p274_p9)  ;;  %s3201_s17 = smov (!%p274_p9), 104   ;;  %s3763_s19 = smov (!%p274_p9), 96   ;;  %vm506_vm4 = vcmask (!%p274_p9), 64512   ;;  %vm1170_vm5 = vcmask (!%p274_p9), 130048  }
  0x11   : > { %2792 = vmatprep.subr.mxu1 (!%p274_p9), %v3199_v4  ;;  %s3204_s20 = smov (!%p274_p9), 112   ;;  %s3761_s21 = smov (!%p274_p9), 64   ;;  %vm1172_vm6 = vcmask (!%p274_p9), 195584   ;;  %vm1374_vm7 = vcmask (!%p274_p9), 523264  }
  0x12   : > { %s3760_s22 = smov (!%p274_p9), 8   ;;  %s3758_s23 = smov (!%p274_p9), 24  }
  0x13   : > { %s3759_s24 = smov (!%p274_p9), 16  }
  0x14   : > { %2793 = vmatpush3.msk.msra.mxu1 (!%p274_p9), %vm331_vm1, %v322_v7 }
  0x15   : > { %s311_s25 = scalar_select %p310_p10, %s3276_s9, 1  ;;  %2984 = vmatprep.subr.bf16.mxu1 %v3198_v2 }
  0x17   : > { %s2627_s12 = sshll.u32 %s311_s25, 3 }
  0x18   : > { %s317_s18 = scalar_lea.vmem %s3750_s1, %s2627_s12  ;;  %s313_s25 = scalar_lea.vmem %s3749_s0, %s2627_s12 }
  0x19   : > { %v318_v9 = vld [vmem:[%s317_s18] sm:$0xff]  ;;  %s3202_s18 = smov 120  }
  0x1a   : > { %2795 = vmatmul.mubr.msk.f32.vlgmr.msra.gmra.mrb[0].mxu1 %vm327_vm2, %v318_v9  ;;  %v405_v15 = vld [vmem:[%s313_s25] sm:$0xff]  ;;  %s3769_s25 = smov 8  }
  0x1b   : > { %2986 = vmatpush3.bf16.msra.mxu1 %v2985_v8  ;;  %2805 = vmatprep.mubr.msk.f32.mxu1 %vm3200_vm0, %v3199_v4 }
  0x1c   : > { %2987 = vmatprep.subr.bf16.mxu1 %v3198_v2 }
  0x1f   : > { %2989 = vmatpush3.bf16.msra.mxu1 %v2988_v12 }
  0x20   : > { %2813 = vmatprep.subr.mxu1 %v3199_v4 }
  0xed   : > { %v401_v14 = vpop.f32.mrb[0].mxu1 }
  0xee   : > { %v3347_v16 = vadd.f32 %v2629_v13, %v401_v14  ;;  %v2796_v17 = vpop.f32.mrb[1].mxu1 }
  0xef   : > { %v1174_v17 = vld [vmem:[%s3753_s4] sm:$0xff] }
  0xf0   : > { %v3350_v18 = vadd.f32 %v405_v15, %v3347_v16 }
  0xf2   : > { %2806 = vmatmul.mubr.msk.f32.vlgmr.msra.gmra.mrb[2].mxu1 %vm423_vm3, %v3350_v18 }
  0xf3   : > { %2815 = vmatprep.mubr.msk.f32.mxu1 %vm3200_vm0, %v3199_v4 }
 0x1c5   : > { %v493_v20 = vpop.f32.mrb[2].mxu1 }
 0x1c6   : > { %v494_v21 = vadd.f32 %v2632_v19, %v493_v20  ;;  %v2807_v22 = vpop.f32.mrb[3].mxu1  ;;  %v1175_v19 = vld [vmem:[%s3753_s4 + $0x8] sm:$0xff] }
 0x1c7   : > { %v2991_v20 = vpack.c.bf16 %v1175_v19, %v1174_v17 }
 0x1c8   : > { %502 = vrot.lane.b32.xlu1 %v494_v21, %s3201_s17  ;;  %498 = vrot.lane.b32.xlu0 %v494_v21, %s3202_s18 }
 0x1cc   : > { %504 = vrot.lane.b32.xlu1 %v494_v21, %s3763_s19  ;;  %500 = vrot.lane.b32.xlu0 %v494_v21, %s3204_s20 }
 0x23a   : > { %v3363_v23 = vpop.permute.xlu1 %502  ;;  %v499_v24 = vpop.permute.xlu0 %498 }
 0x23b   : > { %581 = vrot.lane.b32.xlu0 %v499_v24, %s3763_s19 }
 0x23e   : > { %v505_v25 = vpop.permute.xlu1 %504  ;;  %v3366_v26 = vpop.permute.xlu0 %500 }
 0x23f   : > { %2809 = vmatpush3.xpose.msk.msra.mxu0 %vm506_vm4, %v505_v25  ;;  %733 = vrot.lane.b32.xlu0 %v3363_v23, %s3763_s19 }
 0x240   : > { %657 = vrot.lane.b32.xlu1 %v3366_v26, %s3763_s19  ;;  %2818 = vmatprep.subr.mxu0 %v3199_v4 }
 0x242   : > { %2811 = vmatmul.mubr.msk.f32.vlgmr.msra.gmra.mrb[0].mxu0 %vm506_vm4, %v494_v21 }
 0x243   : > { %2820 = vmatprep.mubr.msk.f32.mxu0 %vm3200_vm0, %v3199_v4 }
 0x2ad   : > { %v582_v27 = vpop.permute.xlu0 %581 }
 0x2ae   : > { %2814 = vmatpush3.xpose.msk.msra.mxu1 %vm506_vm4, %v582_v27 }
 0x2af   : > { %2823 = vmatprep.subr.mxu1 %v3199_v4 }
 0x2b1   : > { %2816 = vmatmul.mubr.msk.f32.vlgmr.msra.gmra.mrb[4].mxu1 %vm506_vm4, %v499_v24  ;;  %v734_v28 = vpop.permute.xlu0 %733 }
 0x2b2   : > { %v658_v29 = vpop.permute.xlu1 %657  ;;  %2824 = vmatpush3.xpose.msk.msra.mxu1 %vm506_vm4, %v734_v28  ;;  %2825 = vmatprep.mubr.msk.f32.mxu1 %vm3200_vm0, %v3199_v4 }
 0x2b3   : > { %2819 = vmatpush3.xpose.msk.msra.mxu0 %vm506_vm4, %v658_v29  ;;  %2833 = vmatprep.subr.mxu1 %v3199_v4 }
 0x2b4   : > { %2828 = vmatprep.subr.mxu0 %v3199_v4 }
 0x2b5   : > { %2826 = vmatmul.mubr.msk.f32.vlgmr.msra.gmra.mrb[6].mxu1 %vm506_vm4, %v3363_v23 }
 0x2b6   : > { %2821 = vmatmul.mubr.msk.f32.vlgmr.msra.gmra.mrb[2].mxu0 %vm506_vm4, %v3366_v26  ;;  %2835 = vmatprep.mubr.msk.f32.mxu1 %vm3200_vm0, %v3199_v4 }
 0x2b7   : > { %2830 = vmatprep.mubr.msk.f32.mxu0 %vm3200_vm0, %v3199_v4 }
 0x315   : > { %v577_v30 = vpop.f32.mrb[0].mxu0 }
 0x316   : > { %v2812_v31 = vpop.f32.mrb[1].mxu0  ;;  %v809_v32 = vsel %vm506_vm4, %v577_v30, -inf }
 0x317   : > { %810 = vmax.xlane.f32.xlu1 %v809_v32 }
 0x384   : > { %v653_v33 = vpop.f32.mrb[4].mxu1 }
 0x385   : > { %v2817_v34 = vpop.f32.mrb[5].mxu1  ;;  %v812_v35 = vsel %vm506_vm4, %v653_v33, -inf }
 0x386   : > { %813 = vmax.xlane.f32.xlu0 %v812_v35 }
 0x388   : > { %v805_v36 = vpop.f32.mrb[6].mxu1 }
 0x389   : > { %v729_v37 = vpop.f32.mrb[2].mxu0  ;;  %v2827_v38 = vpop.f32.mrb[7].mxu1  ;;  %v818_v39 = vsel %vm506_vm4, %v805_v36, -inf }
 0x38a   : > { %v2822_v40 = vpop.f32.mrb[3].mxu0  ;;  %v815_v41 = vsel %vm506_vm4, %v729_v37, -inf  ;;  %819 = vmax.xlane.f32.xlu1 %v818_v39  ;;  %v2646_v38 = vld [vmem:[%s3756_s7 + $0x2] ss:$0 sm:$0xff] }
 0x38b   : > { %816 = vmax.xlane.f32.xlu0 %v815_v41 }
 0x39b   : > { %929 = vrot.lane.b32.xlu1 %v499_v24, %s3761_s21  ;;  %v1177_v24 = vld [vmem:[%s3753_s4 + $0x18] sm:$0xff] }
 0x3a1   : > { %853 = vrot.lane.b32.xlu0 %v494_v21, %s3761_s21 }
 0x3a4   : > { %v811_v42 = vpop.xlane.xlu1 %810 }
 0x3a5   : > { %v821_v43 = vsub.f32 %v577_v30, %v811_v42 }
 0x3a7   : > { %v825_v44 = vmul.f32 1.442695, %v821_v43 }
 0x3a9   : > { %3094 = vpow2.f32 %v825_v44 }
 0x3b3   : > { %v3095_v45 = vpop.eup %3094 }
 0x3b4   : > { %v833_v46 = vsel %vm506_vm4, %v3095_v45, 0.0 }
 0x3c0   : > { %834 = vadd.xlane.f32.xlu0 %v833_v46 }
 0x413   : > { %v814_v47 = vpop.xlane.xlu0 %813 }
 0x414   : > { %v822_v48 = vsub.f32 %v653_v33, %v814_v47 }
 0x416   : > { %v827_v49 = vmul.f32 1.442695, %v822_v48 }
 0x417   : > { %v820_v50 = vpop.xlane.xlu1 %819 }
 0x418   : > { %3096 = vpow2.f32 %v827_v49  ;;  %v817_v51 = vpop.xlane.xlu0 %816  ;;  %v824_v52 = vsub.f32 %v805_v36, %v820_v50  ;;  %v1280_v49 = vld [vmem:[%s3754_s5] sm:$0xff]  ;;  %v1281_v50 = vld [vmem:[%s3754_s5 + $0x8] sm:$0xff] }
 0x419   : > { %v823_v53 = vsub.f32 %v729_v37, %v817_v51  ;;  %v2997_v51 = vpack.c.bf16 %v1281_v50, %v1280_v49 }
 0x41a   : > { %v831_v54 = vmul.f32 1.442695, %v824_v52  ;;  %v1283_v52 = vld [vmem:[%s3754_s5 + $0x18] sm:$0xff] }
 0x41b   : > { %v829_v55 = vmul.f32 1.442695, %v823_v53  ;;  %v930_v56 = vpop.permute.xlu1 %929 }
 0x41c   : > { %3098 = vpow2.f32 %v831_v54  ;;  %v854_v57 = vpop.permute.xlu0 %853  ;;  %2834 = vmatpush3.msra.mxu1 %v930_v56  ;;  %v1362_v54 = vld [vmem:[%s3755_s6] sm:$0xff]  ;;  %v1364_v56 = vld [vmem:[%s3755_s6 + $0x10] sm:$0xff] }
 0x41d   : > { %3100 = vpow2.f32 %v829_v55  ;;  %2829 = vmatpush3.msra.mxu0 %v854_v57  ;;  %2843 = vmatprep.subr.mxu1 %v3199_v4  ;;  %v1363_v55 = vld [vmem:[%s3755_s6 + $0x8] sm:$0xff] }
 0x41e   : > { %2838 = vmatprep.subr.mxu0 %v3199_v4  ;;  %v3003_v57 = vpack.c.bf16 %v1363_v55, %v1362_v54 }
 0x422   : > { %v3097_v58 = vpop.eup %3096 }
 0x423   : > { %v836_v59 = vsel %vm506_vm4, %v3097_v58, 0.0 }
 0x424   : > { %837 = vadd.xlane.f32.xlu1 %v836_v59 }
 0x426   : > { %v3099_v60 = vpop.eup %3098 }
 0x427   : > { %v3101_v61 = vpop.eup %3100  ;;  %v842_v62 = vsel %vm506_vm4, %v3099_v60, 0.0 }
 0x428   : > { %v839_v63 = vsel %vm506_vm4, %v3101_v61, 0.0  ;;  %843 = vadd.xlane.f32.xlu1 %v842_v62 }
 0x429   : > { %840 = vadd.xlane.f32.xlu0 %v839_v63 }
 0x439   : > { %1005 = vrot.lane.b32.xlu1 %v3366_v26, %s3761_s21 }
 0x43f   : > { %1081 = vrot.lane.b32.xlu0 %v3363_v23, %s3761_s21  ;;  %v1176_v23 = vld [vmem:[%s3753_s4 + $0x10] sm:$0xff]  ;;  %s307_s21 = sand.u32 1, %s3188_s28  }
 0x440   : > { %v2994_v25 = vpack.c.bf16 %v1177_v24, %v1176_v23  ;;  %s2626_s13 = sshll.u32 %s307_s21, 3  ;;  %s2538_s19 = scalar_lea.sflag [#allocation3], %s307_s21 }
 0x44d   : > { %v835_v0 = vpop.xlane.xlu0 %834 }
 0x44e   : > { %3102 = vrcp.f32 %v835_v0 }
 0x458   : > { %v3103_v1 = vpop.eup %3102 }
 0x459   : > { %v846_v3 = vmul.f32 %v3103_v1, %v3095_v45 }
 0x45b   : > { %2831 = vmatmul.mubr.msk.f32.vlgmr.msra.gmra.mrb[4].mxu0 %vm506_vm4, %v846_v3 }
 0x45c   : > { %2840 = vmatprep.mubr.msk.f32.mxu0 %vm3200_vm0, %v3199_v4 }
 0x4b1   : > { %v838_v5 = vpop.xlane.xlu1 %837 }
 0x4b2   : > { %3104 = vrcp.f32 %v838_v5  ;;  %v2648_v5 = vld [vmem:[%s3756_s7 + $0x5] ss:$0 sm:$0xff] }
 0x4b5   : > { %v844_v6 = vpop.xlane.xlu1 %843 }
 0x4b6   : > { %v841_v7 = vpop.xlane.xlu0 %840  ;;  %3106 = vrcp.f32 %v844_v6 }
 0x4b7   : > { %3108 = vrcp.f32 %v841_v7  ;;  %v2649_v7 = vld [vmem:[%s3756_s7 + $0x6] ss:$0 sm:$0xff] }
 0x4b9   : > { %v1006_v8 = vpop.permute.xlu1 %1005 }
 0x4ba   : > { %2839 = vmatpush3.msra.mxu0 %v1006_v8  ;;  %v1082_v11 = vpop.permute.xlu0 %1081 }
 0x4bb   : > { %2990 = vmatprep.subr.bf16.mxu0 %v3198_v2 }
 0x4bc   : > { %v3105_v9 = vpop.eup %3104 }
 0x4bd   : > { %v848_v10 = vmul.f32 %v3105_v9, %v3097_v58  ;;  %v1365_v58 = vld [vmem:[%s3755_s6 + $0x18] sm:$0xff] }
 0x4be   : > { %v3006_v59 = vpack.c.bf16 %v1365_v58, %v1364_v56 }
 0x4bf   : > { %2836 = vmatmul.mubr.msk.f32.vlgmr.msra.gmra.mrb[8].mxu1 %vm506_vm4, %v848_v10  ;;  %v1368_v10 = vld [vmem:[%s3755_s6 + $0x30] sm:$0xff] }
 0x4c0   : > { %v3107_v12 = vpop.eup %3106  ;;  %2844 = vmatpush3.msra.mxu1 %v1082_v11  ;;  %2845 = vmatprep.mubr.msk.f32.mxu1 %vm3200_vm0, %v3199_v4  ;;  %v1369_v11 = vld [vmem:[%s3755_s6 + $0x38] sm:$0xff] }
 0x4c1   : > { %v3109_v13 = vpop.eup %3108  ;;  %v852_v14 = vmul.f32 %v3107_v12, %v3099_v60  ;;  %2996 = vmatprep.subr.bf16.mxu1 %v3198_v2  ;;  %v1366_v60 = vld [vmem:[%s3755_s6 + $0x20] sm:$0xff]  ;;  %v3012_v12 = vpack.c.bf16 %v1369_v11, %v1368_v10 }
 0x4c2   : > { %v850_v15 = vmul.f32 %v3109_v13, %v3101_v61  ;;  %v1367_v61 = vld [vmem:[%s3755_s6 + $0x28] sm:$0xff]  ;;  %v2650_v13 = vld [vmem:[%s3756_s7 + $0x3] ss:$0 sm:$0xff] }
 0x4c3   : > { %2846 = vmatmul.mubr.msk.f32.vlgmr.msra.gmra.mrb[10].mxu1 %vm506_vm4, %v852_v14  ;;  %v3009_v62 = vpack.c.bf16 %v1367_v61, %v1366_v60 }
 0x4c4   : > { %2841 = vmatmul.mubr.msk.f32.vlgmr.msra.gmra.mrb[6].mxu0 %vm506_vm4, %v850_v15  ;;  %2867 = vmatprep.mubr.msk.f32.mxu1 %vm3200_vm0, %v3199_v4 }
 0x4c5   : > { %2856 = vmatprep.mubr.msk.f32.mxu0 %vm3200_vm0, %v3199_v4  ;;  %2992 = vmatpush3.bf16.msra.mxu0 %v2991_v20  ;;  %v2652_v20 = vld [vmem:[%s3756_s7 + $0x4] ss:$0 sm:$0xff] }
 0x4c6   : > { %2993 = vmatprep.subr.bf16.mxu0 %v3198_v2  ;;  %2998 = vmatpush3.bf16.msra.mxu1 %v2997_v51 }
 0x4c7   : > { %2999 = vmatprep.subr.bf16.mxu1 %v3198_v2 }
 0x4c9   : > { %2995 = vmatpush3.bf16.msra.mxu0 %v2994_v25 }
 0x4ca   : > { %3002 = vmatprep.subr.bf16.mxu0 %v3198_v2 }
 0x52e   : > { %v925_v21 = vpop.f32.mrb[4].mxu0 }
 0x52f   : > { %v2832_v22 = vpop.f32.mrb[5].mxu0 }
 0x592   : > { %v1001_v26 = vpop.f32.mrb[8].mxu1 }
 0x593   : > { %1158 = vrot.lane.b32.xlu1 %v1001_v26, %s3760_s22  ;;  %v2837_v27 = vpop.f32.mrb[9].mxu1  ;;  %s3771_s22 = smov 24  }
 0x596   : > { %v1153_v28 = vpop.f32.mrb[10].mxu1 }
 0x597   : > { %v1077_v29 = vpop.f32.mrb[6].mxu0  ;;  %1166 = vrot.lane.b32.xlu1 %v1153_v28, %s3758_s23  ;;  %v2847_v30 = vpop.f32.mrb[11].mxu1  ;;  %s3770_s23 = smov 16  }
 0x598   : > { %1162 = vrot.lane.b32.xlu0 %v1077_v29, %s3759_s24  ;;  %v2842_v31 = vpop.f32.mrb[7].mxu0  ;;  %s3767_s24 = smov 96  }
 0x599   : > { %v2656_v31 = vld [vmem:[%s3752_s3 + $0x20] sm:$0xff] }
 0x605   : > { %v1159_v32 = vpop.permute.xlu1 %1158 }
 0x606   : > { %v1169_v34 = vsel %vm506_vm4, %v925_v21, %v1159_v32  ;;  %v2657_v32 = vld [vmem:[%s3752_s3 + $0x28] sm:$0xff] }
 0x609   : > { %v1167_v33 = vpop.permute.xlu1 %1166 }
 0x60a   : > { %v1163_v35 = vpop.permute.xlu0 %1162 }
 0x60b   : > { %v1171_v36 = vsel %vm1170_vm5, %v1169_v34, %v1163_v35  ;;  %v2658_v34 = vld [vmem:[%s3752_s3 + $0x30] sm:$0xff]  ;;  %v2659_v35 = vld [vmem:[%s3752_s3 + $0x38] sm:$0xff] }
 0x60c   : > { %v1173_v37 = vsel %vm1172_vm6, %v1171_v36, %v1167_v33  ;;  %v3015_v33 = vpack.c.bf16 %v2657_v32, %v2656_v31  ;;  %v3018_v36 = vpack.c.bf16 %v2659_v35, %v2658_v34 }
 0x60d   : > { %2857 = vmatmul.mubr.msk.f32.vlgmr.msra.gmra.mrb[8].mxu0 %vm423_vm3, %v1173_v37 }
 0x60e   : > { %2886 = vmatprep.mubr.msk.f32.mxu0 %vm3200_vm0, %v3199_v4  ;;  %3004 = vmatpush3.bf16.msra.mxu0 %v3003_v57 }
 0x60f   : > { %3005 = vmatprep.subr.bf16.mxu0 %v3198_v2 }
 0x612   : > { %3007 = vmatpush3.bf16.msra.mxu0 %v3006_v59 }
 0x613   : > { %3008 = vmatprep.subr.bf16.mxu0 %v3198_v2 }
 0x616   : > { %3010 = vmatpush3.bf16.msra.mxu0 %v3009_v62 }
 0x617   : > { %3011 = vmatprep.subr.bf16.mxu0 %v3198_v2 }
 0x61a   : > { %3013 = vmatpush3.bf16.msra.mxu0 %v3012_v12 }
 0x61b   : > { %2910 = vmatprep.subr.mxu0 %v3199_v4 }
 0x6e0   : > { %v1251_v39 = vpop.f32.mrb[8].mxu0 }
 0x6e1   : > { %v1252_v40 = vadd.f32 %v2646_v38, %v1251_v39  ;;  %v2858_v41 = vpop.f32.mrb[9].mxu0 }
 0x6e2   : > { %v2654_v41 = vld [vmem:[%s3756_s7 + $0x7] ss:$0 sm:$0xff] }
 0x6e3   : > { %v1255_v42 = vadd.f32 %v1252_v40, %v3350_v18  ;;  %v1282_v18 = vld [vmem:[%s3754_s5 + $0x10] sm:$0xff] }
 0x6e4   : > { %v3000_v53 = vpack.c.bf16 %v1283_v52, %v1282_v18 }
 0x6e5   : > { %v1256_v43 = vsel %vm423_vm3, %v1255_v42, 0.0 }
 0x6e6   : > { %1257 = vadd.xlane.f32.xlu0 %v1256_v43  ;;  %3001 = vmatpush3.bf16.msra.mxu1 %v3000_v53  ;;  %v2655_v43 = vld [vmem:[%s3756_s7 + $0x8] ss:$0 sm:$0xff] }
 0x6e7   : > { %3014 = vmatprep.subr.bf16.mxu1 %v3198_v2 }
 0x773   : > { %v1258_v44 = vpop.xlane.xlu0 %1257 }
 0x774   : > { %v1260_v45 = vmul.f32 0.03125, %v1258_v44 }
 0x776   : > { %v1261_v46 = vsub.f32 %v1255_v42, %v1260_v45 }
 0x778   : > { %v1262_v47 = vmul.f32 %v1261_v46, %v1261_v46 }
 0x77a   : > { %v1263_v48 = vsel %vm423_vm3, %v1262_v47, 0.0  ;;  %v2660_v47 = vld [vmem:[%s3756_s7 + $0x9] ss:$0 sm:$0xff] }
 0x77b   : > { %1264 = vadd.xlane.f32.xlu1 %v1263_v48 }
 0x808   : > { %v1265_v63 = vpop.xlane.xlu1 %1264 }
 0x809   : > { %v1266_v0 = vmul.f32 0.03125, %v1265_v63 }
 0x80b   : > { %v1267_v1 = vadd.f32 1e-05, %v1266_v0 }
 0x80d   : > { %3110 = vrsqrt.f32 %v1267_v1 }
 0x817   : > { %v3111_v3 = vpop.eup %3110 }
 0x818   : > { %v1269_v6 = vmul.f32 %v3111_v3, %v1261_v46 }
 0x81a   : > { %v1274_v8 = vmul.f32 %v2648_v5, %v1269_v6 }
 0x81c   : > { %v1279_v9 = vadd.f32 %v2649_v7, %v1274_v8 }
 0x81e   : > { %2868 = vmatmul.mubr.msk.f32.vlgmr.msra.gmra.mrb[12].mxu1 %vm423_vm3, %v1279_v9 }
 0x81f   : > { %2897 = vmatprep.mubr.msk.f32.mxu1 %vm3200_vm0, %v3199_v4  ;;  %3016 = vmatpush3.bf16.msra.mxu1 %v3015_v33 }
 0x820   : > { %3017 = vmatprep.subr.bf16.mxu1 %v3198_v2 }
 0x823   : > { %3019 = vmatpush3.bf16.msra.mxu1 %v3018_v36 }
 0x824   : > { %2900 = vmatprep.subr.mxu1 %v3199_v4 }
 0x8f1   : > { %v1357_v14 = vpop.f32.mrb[12].mxu1 }
 0x8f2   : > { %v1358_v15 = vadd.f32 %v2650_v13, %v1357_v14  ;;  %v2869_v17 = vpop.f32.mrb[13].mxu1 }
 0x8f4   : > { %v1361_v19 = vmax.f32 %v1358_v15, 0.0 }
 0x8f6   : > { %2887 = vmatmul.mubr.msk.f32.vlgmr.msra.gmra.mrb[10].mxu0 %vm1374_vm7, %v1361_v19 }
 0x8f7   : > { %2912 = vmatprep.mubr.msk.f32.mxu0 %vm3200_vm0, %v3199_v4 }
 0x9c9   : > { %v1444_v21 = vpop.f32.mrb[10].mxu0 }
 0x9ca   : > { %v1445_v22 = vadd.f32 %v2652_v20, %v1444_v21  ;;  %v2888_v23 = vpop.f32.mrb[11].mxu0 }
 0x9cc   : > { %v1448_v24 = vadd.f32 %v1445_v22, %v1279_v9 }
 0x9ce   : > { %v1449_v25 = vsel %vm423_vm3, %v1448_v24, 0.0 }
 0x9cf   : > { %1450 = vadd.xlane.f32.xlu0 %v1449_v25 }
 0xa5c   : > { %v1451_v26 = vpop.xlane.xlu0 %1450 }
 0xa5d   : > { %v1452_v27 = vmul.f32 0.03125, %v1451_v26 }
 0xa5f   : > { %v1453_v28 = vsub.f32 %v1448_v24, %v1452_v27 }
 0xa61   : > { %v1454_v29 = vmul.f32 %v1453_v28, %v1453_v28 }
 0xa63   : > { %v1455_v30 = vsel %vm423_vm3, %v1454_v29, 0.0 }
 0xa64   : > { %1456 = vadd.xlane.f32.xlu0 %v1455_v30 }
 0xaf1   : > { %v1457_v37 = vpop.xlane.xlu0 %1456 }
 0xaf2   : > { %v1458_v38 = vmul.f32 0.03125, %v1457_v37 }
 0xaf4   : > { %v1459_v39 = vadd.f32 1e-05, %v1458_v38 }
 0xaf6   : > { %3112 = vrsqrt.f32 %v1459_v39 }
 0xb00   : > { %v3113_v40 = vpop.eup %3112 }
 0xb01   : > { %v1461_v42 = vmul.f32 %v3113_v40, %v1453_v28 }
 0xb03   : > { %v1466_v44 = vmul.f32 %v2654_v41, %v1461_v42 }
 0xb05   : > { %v1471_v45 = vadd.f32 %v2655_v43, %v1466_v44  ;;  %v2674_v44 = vld [vmem:[%s3753_s4 + $0x20] sm:$0xff] }
 0xb07   : > { %v3536_v46 = vadd.f32 %v1471_v45, %v3347_v16  ;;  %v2675_v45 = vld [vmem:[%s3753_s4 + $0x28] sm:$0xff] }
 0xb09   : > { %2898 = vmatmul.mubr.msk.f32.vlgmr.msra.gmra.mrb[14].mxu1 %vm423_vm3, %v3536_v46 }
 0xb0a   : > { %2902 = vmatprep.mubr.msk.f32.mxu1 %vm3200_vm0, %v3199_v4 }
 0xbdc   : > { %v1559_v48 = vpop.f32.mrb[14].mxu1 }
 0xbdd   : > { %v1560_v49 = vadd.f32 %v2660_v47, %v1559_v48  ;;  %v2899_v50 = vpop.f32.mrb[15].mxu1  ;;  %v3021_v47 = vpack.c.bf16 %v2675_v45, %v2674_v44 }
 0xbde   : > { %v2676_v50 = vld [vmem:[%s3753_s4 + $0x30] sm:$0xff] }
 0xbdf   : > { %1566 = vrot.lane.b32.xlu0 %v1560_v49, %s3204_s20  ;;  %1564 = vrot.lane.b32.xlu1 %v1560_v49, %s3202_s18  ;;  %s309_s18 = scalar_lea.vmem [#allocation2], %s2626_s13 }
 0xbe0   : > { %s2551_s20 = sshll.u32 %s309_s18, 4  ;;  %s3708_s20 = int_to_ptr.vmem [resolvable:$true] %s2551_s20 }
 0xbe3   : > { %1568 = vrot.lane.b32.xlu1 %v1560_v49, %s3201_s17  ;;  %s3768_s17 = smov 64  }
 0xbe7   : > { %1570 = vrot.lane.b32.xlu1 %v1560_v49, %s3767_s24 }
 0xc51   : > { %v3549_v16 = vpop.permute.xlu0 %1566  ;;  %v1565_v51 = vpop.permute.xlu1 %1564 }
 0xc52   : > { %1722 = vrot.lane.b32.xlu1 %v3549_v16, %s3767_s24  ;;  %1646 = vrot.lane.b32.xlu0 %v1565_v51, %s3767_s24 }
 0xc55   : > { %v3554_v18 = vpop.permute.xlu1 %1568 }
 0xc56   : > { %1798 = vrot.lane.b32.xlu0 %v3554_v18, %s3767_s24 }
 0xc59   : > { %v1571_v52 = vpop.permute.xlu1 %1570 }
 0xc5a   : > { %2901 = vmatpush3.xpose.msk.msra.mxu1 %vm506_vm4, %v1571_v52 }
 0xc5b   : > { %2905 = vmatprep.subr.mxu1 %v3199_v4 }
 0xc5d   : > { %2903 = vmatmul.mubr.msk.f32.vlgmr.msra.gmra.mrb[16].mxu1 %vm506_vm4, %v1560_v49 }
 0xc5e   : > { %2907 = vmatprep.mubr.msk.f32.mxu1 %vm3200_vm0, %v3199_v4 }
 0xcc4   : > { %v1647_v53 = vpop.permute.xlu0 %1646  ;;  %v1723_v54 = vpop.permute.xlu1 %1722 }
 0xcc5   : > { %2906 = vmatpush3.xpose.msk.msra.mxu1 %vm506_vm4, %v1647_v53  ;;  %2911 = vmatpush3.xpose.msk.msra.mxu0 %vm506_vm4, %v1723_v54 }
 0xcc6   : > { %2915 = vmatprep.subr.mxu1 %v3199_v4  ;;  %2920 = vmatprep.subr.mxu0 %v3199_v4 }
 0xcc8   : > { %v1799_v55 = vpop.permute.xlu0 %1798  ;;  %2908 = vmatmul.mubr.msk.f32.vlgmr.msra.gmra.mrb[18].mxu1 %vm506_vm4, %v1565_v51  ;;  %2913 = vmatmul.mubr.msk.f32.vlgmr.msra.gmra.mrb[12].mxu0 %vm506_vm4, %v3549_v16 }
 0xcc9   : > { %2916 = vmatpush3.xpose.msk.msra.mxu1 %vm506_vm4, %v1799_v55  ;;  %2917 = vmatprep.mubr.msk.f32.mxu1 %vm3200_vm0, %v3199_v4 }
 0xcca   : > { %2925 = vmatprep.subr.mxu1 %v3199_v4  ;;  %2922 = vmatprep.mubr.msk.f32.mxu0 %vm3200_vm0, %v3199_v4 }
 0xccc   : > { %2918 = vmatmul.mubr.msk.f32.vlgmr.msra.gmra.mrb[20].mxu1 %vm506_vm4, %v3554_v18 }
 0xccd   : > { %2927 = vmatprep.mubr.msk.f32.mxu1 %vm3200_vm0, %v3199_v4 }
 0xd30   : > { %v1642_v56 = vpop.f32.mrb[16].mxu1 }
 0xd31   : > { %v2904_v57 = vpop.f32.mrb[17].mxu1  ;;  %v1874_v58 = vsel %vm506_vm4, %v1642_v56, -inf }
 0xd32   : > { %1875 = vmax.xlane.f32.xlu1 %v1874_v58 }
 0xd9b   : > { %v1718_v59 = vpop.f32.mrb[18].mxu1  ;;  %v1794_v60 = vpop.f32.mrb[12].mxu0 }
 0xd9c   : > { %v2909_v61 = vpop.f32.mrb[19].mxu1  ;;  %v2914_v62 = vpop.f32.mrb[13].mxu0  ;;  %v1877_v63 = vsel %vm506_vm4, %v1718_v59, -inf  ;;  %v1880_v3 = vsel %vm506_vm4, %v1794_v60, -inf }
 0xd9d   : > { %1878 = vmax.xlane.f32.xlu0 %v1877_v63  ;;  %v2678_v63 = vld [vmem:[%s3756_s7 + $0xa] ss:$0 sm:$0xff] }
 0xd9f   : > { %v1870_v0 = vpop.f32.mrb[20].mxu1 }
 0xda0   : > { %v2919_v1 = vpop.f32.mrb[21].mxu1  ;;  %v1883_v5 = vsel %vm506_vm4, %v1870_v0, -inf }
 0xda1   : > { %1881 = vmax.xlane.f32.xlu0 %v1880_v3  ;;  %1884 = vmax.xlane.f32.xlu1 %v1883_v5 }
 0xdb2   : > { %1994 = vrot.lane.b32.xlu1 %v1565_v51, %s3768_s17 }
 0xdb7   : > { %1918 = vrot.lane.b32.xlu0 %v1560_v49, %s3768_s17 }
 0xdbf   : > { %v1876_v6 = vpop.xlane.xlu1 %1875 }
 0xdc0   : > { %v1886_v7 = vsub.f32 %v1642_v56, %v1876_v6 }
 0xdc2   : > { %v1890_v8 = vmul.f32 1.442695, %v1886_v7 }
 0xdc4   : > { %3114 = vpow2.f32 %v1890_v8 }
 0xdce   : > { %v3115_v9 = vpop.eup %3114 }
 0xdcf   : > { %v1898_v10 = vsel %vm506_vm4, %v3115_v9, 0.0 }
 0xdd6   : > { %1899 = vadd.xlane.f32.xlu0 %v1898_v10 }
 0xe2a   : > { %v1879_v11 = vpop.xlane.xlu0 %1878 }
 0xe2b   : > { %v1887_v12 = vsub.f32 %v1718_v59, %v1879_v11 }
 0xe2d   : > { %v1892_v13 = vmul.f32 1.442695, %v1887_v12  ;;  %v2683_v12 = vld [vmem:[%s3754_s5 + $0x28] sm:$0xff] }
 0xe2e   : > { %v1882_v14 = vpop.xlane.xlu0 %1881  ;;  %v1885_v15 = vpop.xlane.xlu1 %1884 }
 0xe2f   : > { %3116 = vpow2.f32 %v1892_v13  ;;  %v1888_v17 = vsub.f32 %v1794_v60, %v1882_v14  ;;  %v1889_v19 = vsub.f32 %v1870_v0, %v1885_v15  ;;  %v2685_v14 = vld [vmem:[%s3754_s5 + $0x38] sm:$0xff] }
 0xe31   : > { %v1894_v20 = vmul.f32 1.442695, %v1888_v17  ;;  %v1896_v21 = vmul.f32 1.442695, %v1889_v19  ;;  %v2688_v17 = vld [vmem:[%s3755_s6 + $0x40] sm:$0xff]  ;;  %v2689_v19 = vld [vmem:[%s3755_s6 + $0x48] sm:$0xff] }
 0xe32   : > { %v1919_v22 = vpop.permute.xlu0 %1918  ;;  %v1995_v23 = vpop.permute.xlu1 %1994 }
 0xe33   : > { %3118 = vpow2.f32 %v1894_v20  ;;  %2921 = vmatpush3.msra.mxu0 %v1919_v22  ;;  %2926 = vmatpush3.msra.mxu1 %v1995_v23  ;;  %v2690_v20 = vld [vmem:[%s3755_s6 + $0x50] sm:$0xff]  ;;  %v2691_v22 = vld [vmem:[%s3755_s6 + $0x58] sm:$0xff] }
 0xe34   : > { %3120 = vpow2.f32 %v1896_v21  ;;  %2930 = vmatprep.subr.mxu0 %v3199_v4  ;;  %2935 = vmatprep.subr.mxu1 %v3199_v4  ;;  %v3033_v21 = vpack.c.bf16 %v2689_v19, %v2688_v17  ;;  %v3036_v23 = vpack.c.bf16 %v2691_v22, %v2690_v20 }
 0xe39   : > { %v3117_v24 = vpop.eup %3116 }
 0xe3a   : > { %v1901_v25 = vsel %vm506_vm4, %v3117_v24, 0.0 }
 0xe3b   : > { %1902 = vadd.xlane.f32.xlu1 %v1901_v25  ;;  %v2693_v25 = vld [vmem:[%s3755_s6 + $0x68] sm:$0xff] }
 0xe3d   : > { %v3119_v26 = vpop.eup %3118 }
 0xe3e   : > { %v3121_v27 = vpop.eup %3120  ;;  %v1904_v28 = vsel %vm506_vm4, %v3119_v26, 0.0 }
 0xe3f   : > { %1905 = vadd.xlane.f32.xlu0 %v1904_v28  ;;  %v1907_v29 = vsel %vm506_vm4, %v3121_v27, 0.0 }
 0xe40   : > { %1908 = vadd.xlane.f32.xlu1 %v1907_v29 }
 0xe51   : > { %2070 = vrot.lane.b32.xlu1 %v3549_v16, %s3768_s17  ;;  %v2677_v16 = vld [vmem:[%s3753_s4 + $0x38] sm:$0xff] }
 0xe52   : > { %v3024_v51 = vpack.c.bf16 %v2677_v16, %v2676_v50 }
 0xe55   : > { %2146 = vrot.lane.b32.xlu0 %v3554_v18, %s3768_s17  ;;  %s2701_s17 = sshll.u32 %s3276_s9, 7  ;;  %s3209_s9 = smov [#allocation2]  }
 0xe56   : > { %s3706_s12 = scalar_lea.hbm %s3757_s8, %s2701_s17  ;;  %s3138_s13 = sshll.u32 %s3209_s9, 4  ;;  %s3139_s13 = int_to_ptr.vmem [resolvable:$false] %s3138_s13 }
 0xe57   : > { %p3141_p0 = scmp.lt.s32.totalorder %s3708_s20, %s3139_s13 }
 0xe63   : > { %v1900_v30 = vpop.xlane.xlu0 %1899 }
 0xe64   : > { %3122 = vrcp.f32 %v1900_v30 }
 0xe6e   : > { %v3123_v31 = vpop.eup %3122 }
 0xe6f   : > { %v1911_v32 = vmul.f32 %v3123_v31, %v3115_v9  ;;  %v2680_v31 = vld [vmem:[%s3756_s7 + $0xd] ss:$0 sm:$0xff] }
 0xe71   : > { %2923 = vmatmul.mubr.msk.f32.vlgmr.msra.gmra.mrb[14].mxu0 %vm506_vm4, %v1911_v32 }
 0xe72   : > { %2932 = vmatprep.mubr.msk.f32.mxu0 %vm3200_vm0, %v3199_v4 }
 0xec8   : > { %v1903_v33 = vpop.xlane.xlu1 %1902 }
 0xec9   : > { %3124 = vrcp.f32 %v1903_v33  ;;  %v2681_v33 = vld [vmem:[%s3756_s7 + $0xe] ss:$0 sm:$0xff] }
 0xecc   : > { %v1906_v34 = vpop.xlane.xlu0 %1905 }
 0xecd   : > { %3126 = vrcp.f32 %v1906_v34  ;;  %v1909_v35 = vpop.xlane.xlu1 %1908 }
 0xece   : > { %3128 = vrcp.f32 %v1909_v35 }
 0xed0   : > { %v2147_v39 = vpop.permute.xlu0 %2146 }
 0xed1   : > { %v2071_v36 = vpop.permute.xlu1 %2070 }
 0xed2   : > { %2931 = vmatpush3.msra.mxu0 %v2071_v36  ;;  %v2695_v36 = vld [vmem:[%s3755_s6 + $0x78] sm:$0xff] }
 0xed3   : > { %v3125_v37 = vpop.eup %3124  ;;  %3020 = vmatprep.subr.bf16.mxu0 %v3198_v2 }
 0xed4   : > { %v1913_v38 = vmul.f32 %v3125_v37, %v3117_v24  ;;  %v2692_v24 = vld [vmem:[%s3755_s6 + $0x60] sm:$0xff] }
 0xed6   : > { %2928 = vmatmul.mubr.msk.f32.vlgmr.msra.gmra.mrb[22].mxu1 %vm506_vm4, %v1913_v38  ;;  %v2686_v38 = vld [vmem:[%s3756_s7 + $0xb] ss:$0 sm:$0xff] }
 0xed7   : > { %v3127_v40 = vpop.eup %3126  ;;  %2936 = vmatpush3.msra.mxu1 %v2147_v39  ;;  %2937 = vmatprep.mubr.msk.f32.mxu1 %vm3200_vm0, %v3199_v4 }
 0xed8   : > { %v3129_v41 = vpop.eup %3128  ;;  %v1915_v42 = vmul.f32 %v3127_v40, %v3119_v26  ;;  %3026 = vmatprep.subr.bf16.mxu1 %v3198_v2  ;;  %v3039_v26 = vpack.c.bf16 %v2693_v25, %v2692_v24 }
 0xed9   : > { %v1917_v43 = vmul.f32 %v3129_v41, %v3121_v27 }
 0xeda   : > { %2933 = vmatmul.mubr.msk.f32.vlgmr.msra.gmra.mrb[16].mxu0 %vm506_vm4, %v1915_v42 }
 0xedb   : > { %2938 = vmatmul.mubr.msk.f32.vlgmr.msra.gmra.mrb[24].mxu1 %vm506_vm4, %v1917_v43  ;;  %2948 = vmatprep.mubr.msk.f32.mxu0 %vm3200_vm0, %v3199_v4  ;;  %v2696_v43 = vld [vmem:[%s3756_s7 + $0xc] ss:$0 sm:$0xff] }
 0xedc   : > { %2959 = vmatprep.mubr.msk.f32.mxu1 %vm3200_vm0, %v3199_v4  ;;  %3022 = vmatpush3.bf16.msra.mxu0 %v3021_v47 }
 0xedd   : > { %3023 = vmatprep.subr.bf16.mxu0 %v3198_v2 }
 0xee0   : > { %3025 = vmatpush3.bf16.msra.mxu0 %v3024_v51 }
 0xee1   : > { %3032 = vmatprep.subr.bf16.mxu0 %v3198_v2 }
 0xf44   : > { %v1990_v48 = vpop.f32.mrb[14].mxu0 }
 0xf45   : > { %v2924_v49 = vpop.f32.mrb[15].mxu0 }
 0xfa9   : > { %v2066_v18 = vpop.f32.mrb[22].mxu1 }
 0xfaa   : > { %2223 = vrot.lane.b32.xlu1 %v2066_v18, %s3769_s25  ;;  %v2929_v52 = vpop.f32.mrb[23].mxu1  ;;  %s3134_s25 = scalar_lea.vmem %s3708_s20, 128 }
 0xfab   : > { %p3135_p11 = scmp.ne.s32.totalorder %s3708_s20, %s3134_s25 }
 0xfad   : > { %v2142_v53 = vpop.f32.mrb[16].mxu0  ;;  %p3136_p12 = pnand %p3135_p11, %p3293_p5 }
 0xfae   : > { %v2218_v54 = vpop.f32.mrb[24].mxu1  ;;  %2227 = vrot.lane.b32.xlu0 %v2142_v53, %s3770_s23  ;;  %v2934_v55 = vpop.f32.mrb[17].mxu0  ;;  %s3140_s23 = scalar_lea.vmem %s3139_s13, 256 }
 0xfaf   : > { %2231 = vrot.lane.b32.xlu1 %v2218_v54, %s3771_s22  ;;  %v2939_v56 = vpop.f32.mrb[25].mxu1  ;;  %p3137_p13 = pneg %p3136_p12  ;;  %p3142_p1 = scmp.lt.s32.totalorder %s3140_s23, %s3134_s25 }
 0xfb1   : > { %p3143_p2 = por %p3142_p1, %p3141_p0 }
 0xfb3   : > { %p3144_p3 = pnand %p3143_p2, %p3137_p13 }
0x101c   : > { %v2224_v57 = vpop.permute.xlu1 %2223 }
0x101d   : > { %v2234_v58 = vsel %vm506_vm4, %v1990_v48, %v2224_v57  ;;  %v2698_v57 = vld [vmem:[%s3756_s7 + $0xf] ss:$0 sm:$0xff] }
0x1020   : > { %v2228_v59 = vpop.permute.xlu0 %2227 }
0x1021   : > { %v2235_v60 = vsel %vm1170_vm5, %v2234_v58, %v2228_v59  ;;  %v2232_v61 = vpop.permute.xlu1 %2231  ;;  %v2699_v59 = vld [vmem:[%s3756_s7 + $0x10] ss:$0 sm:$0xff] }
0x1022   : > { %v2236_v62 = vsel %vm1172_vm6, %v2235_v60, %v2232_v61 }
0x1023   : > { %2949 = vmatmul.mubr.msk.f32.vlgmr.msra.gmra.mrb[18].mxu0 %vm423_vm3, %v2236_v62 }
0x1024   : > { %2978 = vmatprep.mubr.msk.f32.mxu0 %vm3200_vm0, %v3199_v4  ;;  %v2682_v4 = vld [vmem:[%s3754_s5 + $0x20] sm:$0xff]  ;;  %3034 = vmatpush3.bf16.msra.mxu0 %v3033_v21 }
0x1025   : > { %v3027_v13 = vpack.c.bf16 %v2683_v12, %v2682_v4  ;;  %3035 = vmatprep.subr.bf16.mxu0 %v3198_v2 }
0x1027   : > { %3028 = vmatpush3.bf16.msra.mxu1 %v3027_v13 }
0x1028   : > { %3029 = vmatprep.subr.bf16.mxu1 %v3198_v2  ;;  %3037 = vmatpush3.bf16.msra.mxu0 %v3036_v23 }
0x1029   : > { %3038 = vmatprep.subr.bf16.mxu0 %v3198_v2 }
0x102c   : > { %3040 = vmatpush3.bf16.msra.mxu0 %v3039_v26 }
0x102d   : > { %3041 = vmatprep.subr.bf16.mxu0 %v3198_v2  ;;  %v2694_v2 = vld [vmem:[%s3755_s6 + $0x70] sm:$0xff] }
0x102e   : > { %v3042_v37 = vpack.c.bf16 %v2695_v36, %v2694_v2 }
0x1030   : > { %3043 = vmatpush3.bf16.msra.mxu0 %v3042_v37 }
0x10f6   : > { %v2315_v0 = vpop.f32.mrb[18].mxu0 }
0x10f7   : > { %v2316_v1 = vadd.f32 %v2678_v63, %v2315_v0  ;;  %v2950_v3 = vpop.f32.mrb[19].mxu0 }
0x10f9   : > { %v2319_v5 = vadd.f32 %v2316_v1, %v3536_v46  ;;  %v2684_v46 = vld [vmem:[%s3754_s5 + $0x30] sm:$0xff] }
0x10fa   : > { %v3030_v15 = vpack.c.bf16 %v2685_v14, %v2684_v46 }
0x10fb   : > { %v2320_v6 = vsel %vm423_vm3, %v2319_v5, 0.0 }
0x10fc   : > { %2321 = vadd.xlane.f32.xlu0 %v2320_v6  ;;  %3031 = vmatpush3.bf16.msra.mxu1 %v3030_v15 }
0x1189   : > { %v2322_v7 = vpop.xlane.xlu0 %2321 }
0x118a   : > { %v2323_v8 = vmul.f32 0.03125, %v2322_v7 }
0x118c   : > { %v2324_v9 = vsub.f32 %v2319_v5, %v2323_v8 }
0x118e   : > { %v2325_v10 = vmul.f32 %v2324_v9, %v2324_v9 }
0x1190   : > { %v2326_v11 = vsel %vm423_vm3, %v2325_v10, 0.0 }
0x1191   : > { %2327 = vadd.xlane.f32.xlu1 %v2326_v11 }
0x121e   : > { %v2328_v27 = vpop.xlane.xlu1 %2327 }
0x121f   : > { %v2329_v28 = vmul.f32 0.03125, %v2328_v27 }
0x1221   : > { %v2330_v29 = vadd.f32 1e-05, %v2329_v28 }
0x1223   : > { %3130 = vrsqrt.f32 %v2330_v29 }
0x122d   : > { %v3131_v30 = vpop.eup %3130 }
0x122e   : > { %v2332_v32 = vmul.f32 %v3131_v30, %v2324_v9 }
0x1230   : > { %v2337_v34 = vmul.f32 %v2680_v31, %v2332_v32 }
0x1232   : > { %v2342_v35 = vadd.f32 %v2681_v33, %v2337_v34 }
0x1234   : > { %2960 = vmatmul.mubr.msk.f32.vlgmr.msra.gmra.mrb[26].mxu1 %vm423_vm3, %v2342_v35 }
0x1307   : > { %v2421_v39 = vpop.f32.mrb[26].mxu1 }
0x1308   : > { %v2422_v40 = vadd.f32 %v2686_v38, %v2421_v39  ;;  %v2961_v41 = vpop.f32.mrb[27].mxu1 }
0x130a   : > { %v2425_v42 = vmax.f32 %v2422_v40, 0.0 }
0x130c   : > { %2979 = vmatmul.mubr.msk.f32.vlgmr.msra.gmra.mrb[20].mxu0 %vm1374_vm7, %v2425_v42 }
0x13df   : > { %v2508_v44 = vpop.f32.mrb[20].mxu0 }
0x13e0   : > { %v2509_v45 = vadd.f32 %v2696_v43, %v2508_v44  ;;  %v2980_v47 = vpop.f32.mrb[21].mxu0 }
0x13e2   : > { %v2512_v48 = vadd.f32 %v2509_v45, %v2342_v35 }
0x13e4   : > { %v2513_v49 = vsel %vm423_vm3, %v2512_v48, 0.0 }
0x13e5   : > { %2514 = vadd.xlane.f32.xlu0 %v2513_v49 }
0x1472   : > { %v2515_v50 = vpop.xlane.xlu0 %2514 }
0x1473   : > { %v2516_v16 = vmul.f32 0.03125, %v2515_v50 }
0x1475   : > { %v2517_v51 = vsub.f32 %v2512_v48, %v2516_v16 }
0x1477   : > { %v2518_v18 = vmul.f32 %v2517_v51, %v2517_v51 }
0x1479   : > { %v2519_v52 = vsel %vm423_vm3, %v2518_v18, 0.0 }
0x147a   : > { %2520 = vadd.xlane.f32.xlu0 %v2519_v52 }
0x1507   : > { %v2521_v53 = vpop.xlane.xlu0 %2520 }
0x1508   : > { %v2522_v54 = vmul.f32 0.03125, %v2521_v53 }
0x150a   : > { %v2523_v55 = vadd.f32 1e-05, %v2522_v54 }
0x150c   : > { %3132 = vrsqrt.f32 %v2523_v55 }
0x1516   : > { %v3133_v56 = vpop.eup %3132 }
0x1517   : > { %v2525_v58 = vmul.f32 %v3133_v56, %v2517_v51 }
0x1519   : > { %v2530_v60 = vmul.f32 %v2698_v57, %v2525_v58 }
0x151b   : > { %v2535_v61 = vadd.f32 %v2699_v59, %v2530_v60 }
0x151d   : > { %2536 = vst.msk [vmem:[%s309_s18] sm:$0xff] %vm423_vm3, %v2535_v61 }
0x151e   : > { %3147 = shalt.err (!%p3144_p3)
}
0x151f   : > { %s3148_s21 = scalar_lea.hbm %s3706_s12, 128  ;;  %s3152_s17 = scalar_lea.hbm %s3757_s8, 256 }
0x1520   : > { %p3149_p4 = scmp.ne.s32.totalorder %s3706_s12, %s3148_s21  ;;  %p3153_p9 = scmp.lt.u32.totalorder %s3706_s12, %s3757_s8 }
0x1521   : > { %p3154_p10 = scmp.lt.u32.totalorder %s3152_s17, %s3148_s21  ;;  %p3156_p12 = scmp.lt.u32.totalorder %s3148_s21, %s3706_s12 }
0x1522   : > { %p3150_p7 = pnand %p3149_p4, %p3293_p5 }
0x1523   : > { %p3155_p11 = por %p3154_p10, %p3153_p9 }
0x1524   : > { %p3151_p8 = pneg %p3150_p7 }
0x1525   : > { %p3157_p13 = por %p3156_p12, %p3155_p11 }
0x1527   : > { %p3158_p0 = pnand %p3157_p13, %p3151_p8 }
0x1529   : > { %3161 = shalt.err (!%p3158_p0)
}
0x152a   : > { %3044 = dma.vmem_to_hbm [thread:$0]  (%p3293_p5), %s3708_s20, 128, %s3706_s12, %s2538_s19  }
0x152b PF: > { %p3050_p1 = scmp.ge.s32.totalorder %s3196_s30, 2  ;;  %s2563_s10 = sand.u32 1, %s3184_s27  }
0x152c   : > { %s2564_s25 = scalar_lea.sflag [#allocation3], %s2563_s10 }
0x152d   : > { %p3047_p2 = pnand %p3050_p1, %p3297_p6 }
0x152f   : > { %3179 = dma.done.wait (!%p3047_p2), %s2564_s25, 128  }
0x1530   : > { %3181 = vsyncadd (!%p3047_p2), %s2564_s25, 4294967168  ;;  %p18_p3 = scmp.ge.s32.totalorder %s3280_s11, 4   ;;  %s3772_s27 = smov %s3188_s28 }
0x1531   : > { %s3773_s28 = smov %s3192_s29  ;;  %s3774_s29 = smov %s3291_s14 }
0x1532   : > { %s3775_s30 = smov %s3280_s11  ;;  %20 = sbr.rel (!%p18_p3) target bundleno = 3 (0x3), region = 94 }
0x1539   :  { %2569 = vsyncpa [#allocation3], 1 }
0x153a   :  { %2571 = vsyncpa [#allocation3 + $0x1], 1 }

</bundles_post_ra>
